<compile_context>
chip_gen: v6e
topology: v6e:2x2x1
jax: 0.10.0
libtpu: 0.0.40
codegen_flags: <defaults>
</compile_context>

<pallas_src>
import jax
import jax.numpy as jnp
from jax.experimental import pallas as pl
from jax.experimental.pallas import tpu as pltpu

LANES = 128            # all output channel/feature dims padded to full lanes
NEG_BIAS = -1e30       # bias on padded logit lanes; exp() underflows to 0


# ----------------------------------------------------------------------------
# Kernel A: conv (im2col matmul) + 2x2 maxpool + bias + ReLU, row-tiled grid
# ----------------------------------------------------------------------------
def conv_pool_relu_kernel(p_ref, w_ref, b_ref, o_ref):
    # p_ref: (4, TM, KKC) bf16 -- one slab per 2x2 pool offset, same row order.
    tm = p_ref.shape[1]
    a = jnp.concatenate([p_ref[0], p_ref[1], p_ref[2], p_ref[3]], axis=0)
    r = jnp.dot(a, w_ref[...], preferred_element_type=jnp.float32)  # (4*TM, 128)
    m = jnp.maximum(jnp.maximum(r[0:tm], r[tm:2 * tm]),
                    jnp.maximum(r[2 * tm:3 * tm], r[3 * tm:4 * tm]))
    o_ref[...] = jnp.maximum(m + b_ref[...], 0.0).astype(o_ref.dtype)


def conv_pool_relu(p_stacked, w_flat, bias, *, tm=512):
    """p_stacked: (4, M, KKC) bf16; w_flat: (KKC, 128) bf16; bias: (1, 128) f32."""
    _, M, KKC = p_stacked.shape
    CP = w_flat.shape[1]
    TM = min(tm, M)                 # M = N*PH*PW is always a multiple of 16
    grid = (pl.cdiv(M, TM),)        # remainder blocks: OOB rows masked on store
    return pl.pallas_call(
        conv_pool_relu_kernel,
        out_shape=jax.ShapeDtypeStruct((M, CP), jnp.bfloat16),
        grid=grid,
        in_specs=[
            pl.BlockSpec((4, TM, KKC), lambda i: (0, i, 0)),
            pl.BlockSpec((KKC, CP), lambda i: (0, 0)),
            pl.BlockSpec((1, CP), lambda i: (0, 0)),
        ],
        out_specs=pl.BlockSpec((TM, CP), lambda i: (i, 0)),
        compiler_params=pltpu.CompilerParams(
            dimension_semantics=("parallel",)),
    )(p_stacked, w_flat, bias)


# ----------------------------------------------------------------------------
# Kernel B: conv2 block + flatten + fc1 + ReLU + fc2 + log_softmax, fused
# ----------------------------------------------------------------------------
def fused_conv2_fc_kernel(p_ref, w2_ref, b2_ref, w1_ref, b1_ref,
                          wf2_ref, bf2_ref, o_ref):
    # p_ref: (64*N, 250) bf16, rows ordered (pool_offset, pool_pos, sample).
    n = o_ref.shape[0]
    q = 16 * n
    r = jnp.dot(p_ref[...], w2_ref[...], preferred_element_type=jnp.float32)
    m = jnp.maximum(jnp.maximum(r[0:q], r[q:2 * q]),
                    jnp.maximum(r[2 * q:3 * q], r[3 * q:4 * q]))       # (16n,128)
    y2 = jnp.maximum(m + b2_ref[...], 0.0).astype(jnp.bfloat16)        # rows (pos, n)

    # fc1 with the NCHW flatten folded into w1_ref[pos, c, h] = W1[h, c*16+pos]
    h = jnp.zeros((n, o_ref.shape[1]), jnp.float32)
    for pos in range(16):
        h = h + jnp.dot(y2[pos * n:(pos + 1) * n, :], w1_ref[pos],
                        preferred_element_type=jnp.float32)
    h = jnp.maximum(h + b1_ref[...], 0.0).astype(jnp.bfloat16)

    logits = jnp.dot(h, wf2_ref[...], preferred_element_type=jnp.float32)
    logits = logits + bf2_ref[...]            # padded lanes get -1e30 bias
    mx = jnp.max(logits, axis=-1, keepdims=True)
    z = logits - mx
    lse = jnp.log(jnp.sum(jnp.exp(z), axis=-1, keepdims=True))
    o_ref[...] = (z - lse).astype(o_ref.dtype)


def fused_head(p2, w2f, b2, w1fc, b1fc, w2fc, b2fc, n):
    R, KKC = p2.shape
    CP = w2f.shape[1]
    f2 = lambda i: (0, 0)
    return pl.pallas_call(
        fused_conv2_fc_kernel,
        out_shape=jax.ShapeDtypeStruct((n, CP), jnp.float32),
        grid=(1,),
        in_specs=[
            pl.BlockSpec((R, KKC), f2),
            pl.BlockSpec((KKC, CP), f2),
            pl.BlockSpec((1, CP), f2),
            pl.BlockSpec((16, CP, CP), lambda i: (0, 0, 0)),
            pl.BlockSpec((1, CP), f2),
            pl.BlockSpec((CP, CP), f2),
            pl.BlockSpec((1, CP), f2),
        ],
        out_specs=pl.BlockSpec((n, CP), f2),
    )(p2, w2f, b2, w1fc, b1fc, w2fc, b2fc)


# ----------------------------------------------------------------------------
# Glue: im2col combining valid conv (k) + 2x2 maxpool, single stacked output
# ----------------------------------------------------------------------------
def _pool_patches(x, k, pos_major):
    """x: (N,H,W,C). Returns ((4, R, k*k*C), (N,PH,PW)).

    Rows are (n, ph, pw) if pos_major=False, else (ph, pw, n).
    Feature order is (kh, kw, c). 36 unique strided slices (not 100).
    """
    N, H, W, C = x.shape
    PH, PW = (H - k + 1) // 2, (W - k + 1) // 2
    base = {}
    for sh in range(k + 1):
        for sw in range(k + 1):
            base[(sh, sw)] = x[:, sh:sh + 2 * PH:2, sw:sw + 2 * PW:2, :]
    offs = []
    for dh in range(2):
        for dw in range(2):
            taps = [base[(dh + kh, dw + kw)] for kh in range(k) for kw in range(k)]
            p = jnp.stack(taps, axis=3)                       # (N,PH,PW,k*k,C)
            if pos_major:
                p = jnp.transpose(p, (1, 2, 0, 3, 4))         # (PH,PW,N,k*k,C)
            offs.append(p.reshape(-1, k * k * C))
    return jnp.stack(offs, axis=0), (N, PH, PW)


# ----------------------------------------------------------------------------
# One-time parameter preparation (all layout work hoisted out of the fwd path)
# ----------------------------------------------------------------------------
def prepare_params(params):
    w1c, b1c, w2c, b2c, wf1, bf1, wf2, bf2 = params
    CP = LANES
    # conv1 weight (10,1,5,5) -> (kh,kw,cin,cout) -> (25,10) -> pad (25,128)
    w1f = jnp.transpose(w1c, (2, 3, 1, 0)).reshape(25, 10)
    w1f = jnp.pad(w1f, ((0, 0), (0, CP - 10))).astype(jnp.bfloat16)
    b1 = jnp.pad(b1c, (0, CP - 10)).reshape(1, CP).astype(jnp.float32)
    # conv2 weight (20,10,5,5) -> (250,20) -> pad (250,128)
    w2f = jnp.transpose(w2c, (2, 3, 1, 0)).reshape(250, 20)
    w2f = jnp.pad(w2f, ((0, 0), (0, CP - 20))).astype(jnp.bfloat16)
    b2 = jnp.pad(b2c, (0, CP - 20)).reshape(1, CP).astype(jnp.float32)
    # fc1 (50,320): PyTorch flatten index = c*16 + pos  ->  (pos, c, h) layout
    w1fc = jnp.transpose(wf1.reshape(50, 20, 16), (2, 1, 0))   # (16,20,50)
    w1fc = jnp.pad(w1fc, ((0, 0), (0, CP - 20), (0, CP - 50))).astype(jnp.bfloat16)
    b1fc = jnp.pad(bf1, (0, CP - 50)).reshape(1, CP).astype(jnp.float32)
    # fc2 (10,50) -> (50,10) -> pad (128,128); padded logits biased to -1e30
    w2fc = jnp.pad(wf2.T, ((0, CP - 50), (0, CP - 10))).astype(jnp.bfloat16)
    b2fc = jnp.concatenate(
        [bf2.astype(jnp.float32),
         jnp.full((CP - 10,), NEG_BIAS, jnp.float32)]).reshape(1, CP)
    return (w1f, b1, w2f, b2, w1fc, b1fc, w2fc, b2fc)


# ----------------------------------------------------------------------------
# Full forward pass (inference semantics of Net.forward)
# ----------------------------------------------------------------------------
@jax.jit
def net_forward(x_nchw, prepped):
    w1f, b1, w2f, b2, w1fc, b1fc, w2fc, b2fc = prepped
    N = x_nchw.shape[0]
    x = x_nchw.astype(jnp.bfloat16).reshape(N, 28, 28, 1)

    # conv1 block: (N,28,28,1) -> (N*144, 128bf16), rows (n, ph, pw)
    p1, (_, PH, PW) = _pool_patches(x, 5, pos_major=False)     # (4, N*144, 25)
    y1 = conv_pool_relu(p1, w1f, b1)                           # (N*144, 128)
    y1 = y1[:, :10].reshape(N, PH, PW, 10)                     # (N,12,12,10)

    # conv2 block + flatten + fc head, fused; rows (offset, pos, n)
    p2, _ = _pool_patches(y1, 5, pos_major=True)               # (4, 16N, 250)
    p2 = p2.reshape(4 * 16 * N, 250)
    out = fused_head(p2, w2f, b2, w1fc, b1fc, w2fc, b2fc, N)   # (N, 128)
    return out[:, :10]


# ----------------------------------------------------------------------------
# Pure-JAX f32 reference (eval-mode semantics) and parameter init
# ----------------------------------------------------------------------------
def reference_forward(x, params):
    w1c, b1c, w2c, b2c, wf1, bf1, wf2, bf2 = params
    dn = ('NCHW', 'OIHW', 'NCHW')
    y = jax.lax.conv_general_dilated(x, w1c, (1, 1), 'VALID', dimension_numbers=dn)
    y = y + b1c.reshape(1, -1, 1, 1)
    y = jax.lax.reduce_window(y, -jnp.inf, jax.lax.max, (1, 1, 2, 2), (1, 1, 2, 2), 'VALID')
    y = jnp.maximum(y, 0.0)
    y = jax.lax.conv_general_dilated(y, w2c, (1, 1), 'VALID', dimension_numbers=dn)
    y = y + b2c.reshape(1, -1, 1, 1)
    y = jax.lax.reduce_window(y, -jnp.inf, jax.lax.max, (1, 1, 2, 2), (1, 1, 2, 2), 'VALID')
    y = jnp.maximum(y, 0.0)
    y = y.reshape(y.shape[0], -1)                              # NCHW flatten -> 320
    y = jnp.maximum(y @ wf1.T + bf1, 0.0)
    y = y @ wf2.T + bf2
    return jax.nn.log_softmax(y, axis=-1)


def init_params(key):
    ks = jax.random.split(key, 8)
    s = 0.1
    w1c = jax.random.normal(ks[0], (10, 1, 5, 5), jnp.float32) * s
    b1c = jax.random.normal(ks[1], (10,), jnp.float32) * s
    w2c = jax.random.normal(ks[2], (20, 10, 5, 5), jnp.float32) * s
    b2c = jax.random.normal(ks[3], (20,), jnp.float32) * s
    wf1 = jax.random.normal(ks[4], (50, 320), jnp.float32) * s
    bf1 = jax.random.normal(ks[5], (50,), jnp.float32) * s
    wf2 = jax.random.normal(ks[6], (10, 50), jnp.float32) * s
    bf2 = jax.random.normal(ks[7], (10,), jnp.float32) * s
    return (w1c, b1c, w2c, b2c, wf1, bf1, wf2, bf2)


if __name__ == "__main__":
    key = jax.random.PRNGKey(0)
    kx, kp = jax.random.split(key)
    # 28x28 single-channel input is required by the 320-feature flatten.
    x = jax.random.normal(kx, (2, 1, 28, 28), jnp.float32)
    params = init_params(kp)
    prepped = prepare_params(params)        # one-time layout work, outside fwd

    out = jax.block_until_ready(net_forward(x, prepped))

    assert out.shape == (2, 10), out.shape
    # log_softmax rows must sum to 1 in prob space (exact up to f32 rounding).
    assert jnp.allclose(jnp.sum(jnp.exp(out), axis=-1), 1.0, atol=1e-4)
    # Cross-check against a pure-JAX f32 reference (bf16 matmuls -> loose tol).
    ref = reference_forward(x, params)
    assert float(jnp.max(jnp.abs(out - ref))) < 0.1, float(jnp.max(jnp.abs(out - ref)))
    print("KERNEL_OK")
</pallas_src>

<mosaic_0001>
module attributes {stable_mosaic.version = 11 : i64} {
  func.func @conv_pool_relu_kernel(%arg0: i32, %arg1: memref<4x288x25xbf16, #tpu.memory_space<vmem>>, %arg2: memref<25x128xbf16, #tpu.memory_space<vmem>>, %arg3: memref<1x128xf32, #tpu.memory_space<vmem>>, %arg4: memref<288x128xbf16, #tpu.memory_space<vmem>>) attributes {dimension_semantics = [#tpu.dimension_semantics<parallel>], iteration_bounds = array<i64: 1>, scalar_prefetch = 0 : i64, scratch_operands = 0 : i64, tpu.core_type = #tpu.core_type<tc>, window_params = [{transform_indices = @transform_0, window_bounds = array<i64: 4, 288, 25>}, {pipeline_mode = #tpu.pipeline_mode<synchronous>, transform_indices = @transform_1, window_bounds = array<i64: 25, 128>}, {pipeline_mode = #tpu.pipeline_mode<synchronous>, transform_indices = @transform_2, window_bounds = array<i64: 1, 128>}, {transform_indices = @transform_3, window_bounds = array<i64: 288, 128>}]} {
    %c0 = arith.constant 0 : index
    %c0_0 = arith.constant 0 : index
    %c0_1 = arith.constant 0 : index
    %0 = vector.load %arg1[%c0, %c0_0, %c0_1] : memref<4x288x25xbf16, #tpu.memory_space<vmem>>, vector<1x288x25xbf16>
    %1 = vector.shape_cast %0 : vector<1x288x25xbf16> to vector<288x25xbf16>
    %c1 = arith.constant 1 : index
    %c0_2 = arith.constant 0 : index
    %c0_3 = arith.constant 0 : index
    %2 = vector.load %arg1[%c1, %c0_2, %c0_3] : memref<4x288x25xbf16, #tpu.memory_space<vmem>>, vector<1x288x25xbf16>
    %3 = vector.shape_cast %2 : vector<1x288x25xbf16> to vector<288x25xbf16>
    %c2 = arith.constant 2 : index
    %c0_4 = arith.constant 0 : index
    %c0_5 = arith.constant 0 : index
    %4 = vector.load %arg1[%c2, %c0_4, %c0_5] : memref<4x288x25xbf16, #tpu.memory_space<vmem>>, vector<1x288x25xbf16>
    %5 = vector.shape_cast %4 : vector<1x288x25xbf16> to vector<288x25xbf16>
    %c3 = arith.constant 3 : index
    %c0_6 = arith.constant 0 : index
    %c0_7 = arith.constant 0 : index
    %6 = vector.load %arg1[%c3, %c0_6, %c0_7] : memref<4x288x25xbf16, #tpu.memory_space<vmem>>, vector<1x288x25xbf16>
    %7 = vector.shape_cast %6 : vector<1x288x25xbf16> to vector<288x25xbf16>
    %8 = tpu.concatenate %1, %3, %5, %7 in 0 : vector<288x25xbf16>, vector<288x25xbf16>, vector<288x25xbf16>, vector<288x25xbf16> -> vector<1152x25xbf16>
    %c0_8 = arith.constant 0 : index
    %c0_9 = arith.constant 0 : index
    %9 = vector.load %arg2[%c0_8, %c0_9] : memref<25x128xbf16, #tpu.memory_space<vmem>>, vector<25x128xbf16>
    %cst = arith.constant dense<0.000000e+00> : vector<1152x128xf32>
    %10 = tpu.matmul %8, %9, %cst {dimension_numbers = #tpu.dot_dimension_numbers<[1], [0], [0], [1], [0, 0, 1, 1], [], []>} : vector<1152x25xbf16>, vector<25x128xbf16>, vector<1152x128xf32> -> vector<1152x128xf32>
    %11 = vector.extract_strided_slice %10 {offsets = [0, 0], sizes = [288, 128], strides = [1, 1]} : vector<1152x128xf32> to vector<288x128xf32>
    %12 = vector.extract_strided_slice %10 {offsets = [288, 0], sizes = [288, 128], strides = [1, 1]} : vector<1152x128xf32> to vector<288x128xf32>
    %13 = arith.maximumf %11, %12 : vector<288x128xf32>
    %14 = vector.extract_strided_slice %10 {offsets = [576, 0], sizes = [288, 128], strides = [1, 1]} : vector<1152x128xf32> to vector<288x128xf32>
    %15 = vector.extract_strided_slice %10 {offsets = [864, 0], sizes = [288, 128], strides = [1, 1]} : vector<1152x128xf32> to vector<288x128xf32>
    %16 = arith.maximumf %14, %15 : vector<288x128xf32>
    %17 = arith.maximumf %13, %16 : vector<288x128xf32>
    %c0_10 = arith.constant 0 : index
    %c0_11 = arith.constant 0 : index
    %18 = vector.load %arg3[%c0_10, %c0_11] : memref<1x128xf32, #tpu.memory_space<vmem>>, vector<1x128xf32>
    %19 = vector.broadcast %18 : vector<1x128xf32> to vector<288x128xf32>
    %20 = arith.addf %17, %19 : vector<288x128xf32>
    %cst_12 = arith.constant 0.000000e+00 : f32
    %21 = vector.broadcast %cst_12 : f32 to vector<288x128xf32>
    %22 = arith.maximumf %20, %21 : vector<288x128xf32>
    %23 = arith.truncf %22 : vector<288x128xf32> to vector<288x128xbf16>
    %c0_13 = arith.constant 0 : index
    %c0_14 = arith.constant 0 : index
    %24 = vector.load %arg4[%c0_13, %c0_14] : memref<288x128xbf16, #tpu.memory_space<vmem>>, vector<288x128xbf16>
    tpu.vector_store %arg4[%c0_13, %c0_14], %23 {strides = array<i32>} : memref<288x128xbf16, #tpu.memory_space<vmem>>, vector<288x128xbf16>,
    return
  }
  func.func @transform_0(%arg0: i32) -> (i32, i32, i32) {
    %c0_i32 = arith.constant 0 : i32
    %c0_i32_0 = arith.constant 0 : i32
    %c0_i32_1 = arith.constant 0 : i32
    return %c0_i32, %arg0, %c0_i32_0 : i32, i32, i32
  }
  func.func @transform_1(%arg0: i32) -> (i32, i32) {
    %c0_i32 = arith.constant 0 : i32
    %c0_i32_0 = arith.constant 0 : i32
    %c0_i32_1 = arith.constant 0 : i32
    return %c0_i32, %c0_i32_0 : i32, i32
  }
  func.func @transform_2(%arg0: i32) -> (i32, i32) {
    %c0_i32 = arith.constant 0 : i32
    %c0_i32_0 = arith.constant 0 : i32
    %c0_i32_1 = arith.constant 0 : i32
    return %c0_i32, %c0_i32_0 : i32, i32
  }
  func.func @transform_3(%arg0: i32) -> (i32, i32) {
    %c0_i32 = arith.constant 0 : i32
    %c0_i32_0 = arith.constant 0 : i32
    return %arg0, %c0_i32 : i32, i32
  }
}

module attributes {stable_mosaic.version = 11 : i64} {
  func.func @fused_conv2_fc_kernel(%arg0: i32, %arg1: memref<128x250xbf16, #tpu.memory_space<vmem>>, %arg2: memref<250x128xbf16, #tpu.memory_space<vmem>>, %arg3: memref<1x128xf32, #tpu.memory_space<vmem>>, %arg4: memref<16x128x128xbf16, #tpu.memory_space<vmem>>, %arg5: memref<1x128xf32, #tpu.memory_space<vmem>>, %arg6: memref<128x128xbf16, #tpu.memory_space<vmem>>, %arg7: memref<1x128xf32, #tpu.memory_space<vmem>>, %arg8: memref<2x128xf32, #tpu.memory_space<vmem>>) attributes {dimension_semantics = [#tpu.dimension_semantics<arbitrary>], iteration_bounds = array<i64: 1>, scalar_prefetch = 0 : i64, scratch_operands = 0 : i64, tpu.core_type = #tpu.core_type<tc>, window_params = [{pipeline_mode = #tpu.pipeline_mode<synchronous>, transform_indices = @transform_0, window_bounds = array<i64: 128, 250>}, {pipeline_mode = #tpu.pipeline_mode<synchronous>, transform_indices = @transform_1, window_bounds = array<i64: 250, 128>}, {pipeline_mode = #tpu.pipeline_mode<synchronous>, transform_indices = @transform_2, window_bounds = array<i64: 1, 128>}, {pipeline_mode = #tpu.pipeline_mode<synchronous>, transform_indices = @transform_3, window_bounds = array<i64: 16, 128, 128>}, {pipeline_mode = #tpu.pipeline_mode<synchronous>, transform_indices = @transform_4, window_bounds = array<i64: 1, 128>}, {pipeline_mode = #tpu.pipeline_mode<synchronous>, transform_indices = @transform_5, window_bounds = array<i64: 128, 128>}, {pipeline_mode = #tpu.pipeline_mode<synchronous>, transform_indices = @transform_6, window_bounds = array<i64: 1, 128>}, {pipeline_mode = #tpu.pipeline_mode<synchronous>, transform_indices = @transform_7, window_bounds = array<i64: 2, 128>}]} {
    %c0 = arith.constant 0 : index
    %c0_0 = arith.constant 0 : index
    %0 = vector.load %arg1[%c0, %c0_0] : memref<128x250xbf16, #tpu.memory_space<vmem>>, vector<128x250xbf16>
    %c0_1 = arith.constant 0 : index
    %c0_2 = arith.constant 0 : index
    %1 = vector.load %arg2[%c0_1, %c0_2] : memref<250x128xbf16, #tpu.memory_space<vmem>>, vector<250x128xbf16>
    %cst = arith.constant dense<0.000000e+00> : vector<128x128xf32>
    %2 = tpu.matmul %0, %1, %cst {dimension_numbers = #tpu.dot_dimension_numbers<[1], [0], [0], [1], [0, 0, 1, 1], [], []>} : vector<128x250xbf16>, vector<250x128xbf16>, vector<128x128xf32> -> vector<128x128xf32>
    %3 = vector.extract_strided_slice %2 {offsets = [0, 0], sizes = [32, 128], strides = [1, 1]} : vector<128x128xf32> to vector<32x128xf32>
    %4 = vector.extract_strided_slice %2 {offsets = [32, 0], sizes = [32, 128], strides = [1, 1]} : vector<128x128xf32> to vector<32x128xf32>
    %5 = arith.maximumf %3, %4 : vector<32x128xf32>
    %6 = vector.extract_strided_slice %2 {offsets = [64, 0], sizes = [32, 128], strides = [1, 1]} : vector<128x128xf32> to vector<32x128xf32>
    %7 = vector.extract_strided_slice %2 {offsets = [96, 0], sizes = [32, 128], strides = [1, 1]} : vector<128x128xf32> to vector<32x128xf32>
    %8 = arith.maximumf %6, %7 : vector<32x128xf32>
    %9 = arith.maximumf %5, %8 : vector<32x128xf32>
    %c0_3 = arith.constant 0 : index
    %c0_4 = arith.constant 0 : index
    %10 = vector.load %arg3[%c0_3, %c0_4] : memref<1x128xf32, #tpu.memory_space<vmem>>, vector<1x128xf32>
    %11 = vector.broadcast %10 : vector<1x128xf32> to vector<32x128xf32>
    %12 = arith.addf %9, %11 : vector<32x128xf32>
    %cst_5 = arith.constant 0.000000e+00 : f32
    %13 = vector.broadcast %cst_5 : f32 to vector<32x128xf32>
    %14 = arith.maximumf %12, %13 : vector<32x128xf32>
    %15 = arith.truncf %14 : vector<32x128xf32> to vector<32x128xbf16>
    %cst_6 = arith.constant 0.000000e+00 : f32
    %16 = vector.broadcast %cst_6 : f32 to vector<2x128xf32>
    %17 = vector.extract_strided_slice %15 {offsets = [0, 0], sizes = [2, 128], strides = [1, 1]} : vector<32x128xbf16> to vector<2x128xbf16>
    %c0_7 = arith.constant 0 : index
    %c0_8 = arith.constant 0 : index
    %c0_9 = arith.constant 0 : index
    %18 = vector.load %arg4[%c0_7, %c0_8, %c0_9] : memref<16x128x128xbf16, #tpu.memory_space<vmem>>, vector<1x128x128xbf16>
    %19 = vector.shape_cast %18 : vector<1x128x128xbf16> to vector<128x128xbf16>
    %cst_10 = arith.constant dense<0.000000e+00> : vector<2x128xf32>
    %20 = tpu.matmul %17, %19, %cst_10 {dimension_numbers = #tpu.dot_dimension_numbers<[1], [0], [0], [1], [0, 0, 1, 1], [], []>} : vector<2x128xbf16>, vector<128x128xbf16>, vector<2x128xf32> -> vector<2x128xf32>
    %21 = arith.addf %16, %20 : vector<2x128xf32>
    %22 = vector.extract_strided_slice %15 {offsets = [2, 0], sizes = [2, 128], strides = [1, 1]} : vector<32x128xbf16> to vector<2x128xbf16>
    %c1 = arith.constant 1 : index
    %c0_11 = arith.constant 0 : index
    %c0_12 = arith.constant 0 : index
    %23 = vector.load %arg4[%c1, %c0_11, %c0_12] : memref<16x128x128xbf16, #tpu.memory_space<vmem>>, vector<1x128x128xbf16>
    %24 = vector.shape_cast %23 : vector<1x128x128xbf16> to vector<128x128xbf16>
    %cst_13 = arith.constant dense<0.000000e+00> : vector<2x128xf32>
    %25 = tpu.matmul %22, %24, %cst_13 {dimension_numbers = #tpu.dot_dimension_numbers<[1], [0], [0], [1], [0, 0, 1, 1], [], []>} : vector<2x128xbf16>, vector<128x128xbf16>, vector<2x128xf32> -> vector<2x128xf32>
    %26 = arith.addf %21, %25 : vector<2x128xf32>
    %27 = vector.extract_strided_slice %15 {offsets = [4, 0], sizes = [2, 128], strides = [1, 1]} : vector<32x128xbf16> to vector<2x128xbf16>
    %c2 = arith.constant 2 : index
    %c0_14 = arith.constant 0 : index
    %c0_15 = arith.constant 0 : index
    %28 = vector.load %arg4[%c2, %c0_14, %c0_15] : memref<16x128x128xbf16, #tpu.memory_space<vmem>>, vector<1x128x128xbf16>
    %29 = vector.shape_cast %28 : vector<1x128x128xbf16> to vector<128x128xbf16>
    %cst_16 = arith.constant dense<0.000000e+00> : vector<2x128xf32>
    %30 = tpu.matmul %27, %29, %cst_16 {dimension_numbers = #tpu.dot_dimension_numbers<[1], [0], [0], [1], [0, 0, 1, 1], [], []>} : vector<2x128xbf16>, vector<128x128xbf16>, vector<2x128xf32> -> vector<2x128xf32>
    %31 = arith.addf %26, %30 : vector<2x128xf32>
    %32 = vector.extract_strided_slice %15 {offsets = [6, 0], sizes = [2, 128], strides = [1, 1]} : vector<32x128xbf16> to vector<2x128xbf16>
    %c3 = arith.constant 3 : index
    %c0_17 = arith.constant 0 : index
    %c0_18 = arith.constant 0 : index
    %33 = vector.load %arg4[%c3, %c0_17, %c0_18] : memref<16x128x128xbf16, #tpu.memory_space<vmem>>, vector<1x128x128xbf16>
    %34 = vector.shape_cast %33 : vector<1x128x128xbf16> to vector<128x128xbf16>
    %cst_19 = arith.constant dense<0.000000e+00> : vector<2x128xf32>
    %35 = tpu.matmul %32, %34, %cst_19 {dimension_numbers = #tpu.dot_dimension_numbers<[1], [0], [0], [1], [0, 0, 1, 1], [], []>} : vector<2x128xbf16>, vector<128x128xbf16>, vector<2x128xf32> -> vector<2x128xf32>
    %36 = arith.addf %31, %35 : vector<2x128xf32>
    %37 = vector.extract_strided_slice %15 {offsets = [8, 0], sizes = [2, 128], strides = [1, 1]} : vector<32x128xbf16> to vector<2x128xbf16>
    %c4 = arith.constant 4 : index
    %c0_20 = arith.constant 0 : index
    %c0_21 = arith.constant 0 : index
    %38 = vector.load %arg4[%c4, %c0_20, %c0_21] : memref<16x128x128xbf16, #tpu.memory_space<vmem>>, vector<1x128x128xbf16>
    %39 = vector.shape_cast %38 : vector<1x128x128xbf16> to vector<128x128xbf16>
    %cst_22 = arith.constant dense<0.000000e+00> : vector<2x128xf32>
    %40 = tpu.matmul %37, %39, %cst_22 {dimension_numbers = #tpu.dot_dimension_numbers<[1], [0], [0], [1], [0, 0, 1, 1], [], []>} : vector<2x128xbf16>, vector<128x128xbf16>, vector<2x128xf32> -> vector<2x128xf32>
    %41 = arith.addf %36, %40 : vector<2x128xf32>
    %42 = vector.extract_strided_slice %15 {offsets = [10, 0], sizes = [2, 128], strides = [1, 1]} : vector<32x128xbf16> to vector<2x128xbf16>
    %c5 = arith.constant 5 : index
    %c0_23 = arith.constant 0 : index
    %c0_24 = arith.constant 0 : index
    %43 = vector.load %arg4[%c5, %c0_23, %c0_24] : memref<16x128x128xbf16, #tpu.memory_space<vmem>>, vector<1x128x128xbf16>
    %44 = vector.shape_cast %43 : vector<1x128x128xbf16> to vector<128x128xbf16>
    %cst_25 = arith.constant dense<0.000000e+00> : vector<2x128xf32>
    %45 = tpu.matmul %42, %44, %cst_25 {dimension_numbers = #tpu.dot_dimension_numbers<[1], [0], [0], [1], [0, 0, 1, 1], [], []>} : vector<2x128xbf16>, vector<128x128xbf16>, vector<2x128xf32> -> vector<2x128xf32>
    %46 = arith.addf %41, %45 : vector<2x128xf32>
    %47 = vector.extract_strided_slice %15 {offsets = [12, 0], sizes = [2, 128], strides = [1, 1]} : vector<32x128xbf16> to vector<2x128xbf16>
    %c6 = arith.constant 6 : index
    %c0_26 = arith.constant 0 : index
    %c0_27 = arith.constant 0 : index
    %48 = vector.load %arg4[%c6, %c0_26, %c0_27] : memref<16x128x128xbf16, #tpu.memory_space<vmem>>, vector<1x128x128xbf16>
    %49 = vector.shape_cast %48 : vector<1x128x128xbf16> to vector<128x128xbf16>
    %cst_28 = arith.constant dense<0.000000e+00> : vector<2x128xf32>
    %50 = tpu.matmul %47, %49, %cst_28 {dimension_numbers = #tpu.dot_dimension_numbers<[1], [0], [0], [1], [0, 0, 1, 1], [], []>} : vector<2x128xbf16>, vector<128x128xbf16>, vector<2x128xf32> -> vector<2x128xf32>
    %51 = arith.addf %46, %50 : vector<2x128xf32>
    %52 = vector.extract_strided_slice %15 {offsets = [14, 0], sizes = [2, 128], strides = [1, 1]} : vector<32x128xbf16> to vector<2x128xbf16>
    %c7 = arith.constant 7 : index
    %c0_29 = arith.constant 0 : index
    %c0_30 = arith.constant 0 : index
    %53 = vector.load %arg4[%c7, %c0_29, %c0_30] : memref<16x128x128xbf16, #tpu.memory_space<vmem>>, vector<1x128x128xbf16>
    %54 = vector.shape_cast %53 : vector<1x128x128xbf16> to vector<128x128xbf16>
    %cst_31 = arith.constant dense<0.000000e+00> : vector<2x128xf32>
    %55 = tpu.matmul %52, %54, %cst_31 {dimension_numbers = #tpu.dot_dimension_numbers<[1], [0], [0], [1], [0, 0, 1, 1], [], []>} : vector<2x128xbf16>, vector<128x128xbf16>, vector<2x128xf32> -> vector<2x128xf32>
    %56 = arith.addf %51, %55 : vector<2x128xf32>
    %57 = vector.extract_strided_slice %15 {offsets = [16, 0], sizes = [2, 128], strides = [1, 1]} : vector<32x128xbf16> to vector<2x128xbf16>
    %c8 = arith.constant 8 : index
    %c0_32 = arith.constant 0 : index
    %c0_33 = arith.constant 0 : index
    %58 = vector.load %arg4[%c8, %c0_32, %c0_33] : memref<16x128x128xbf16, #tpu.memory_space<vmem>>, vector<1x128x128xbf16>
    %59 = vector.shape_cast %58 : vector<1x128x128xbf16> to vector<128x128xbf16>
    %cst_34 = arith.constant dense<0.000000e+00> : vector<2x128xf32>
    %60 = tpu.matmul %57, %59, %cst_34 {dimension_numbers = #tpu.dot_dimension_numbers<[1], [0], [0], [1], [0, 0, 1, 1], [], []>} : vector<2x128xbf16>, vector<128x128xbf16>, vector<2x128xf32> -> vector<2x128xf32>
    %61 = arith.addf %56, %60 : vector<2x128xf32>
    %62 = vector.extract_strided_slice %15 {offsets = [18, 0], sizes = [2, 128], strides = [1, 1]} : vector<32x128xbf16> to vector<2x128xbf16>
    %c9 = arith.constant 9 : index
    %c0_35 = arith.constant 0 : index
    %c0_36 = arith.constant 0 : index
    %63 = vector.load %arg4[%c9, %c0_35, %c0_36] : memref<16x128x128xbf16, #tpu.memory_space<vmem>>, vector<1x128x128xbf16>
    %64 = vector.shape_cast %63 : vector<1x128x128xbf16> to vector<128x128xbf16>
    %cst_37 = arith.constant dense<0.000000e+00> : vector<2x128xf32>
    %65 = tpu.matmul %62, %64, %cst_37 {dimension_numbers = #tpu.dot_dimension_numbers<[1], [0], [0], [1], [0, 0, 1, 1], [], []>} : vector<2x128xbf16>, vector<128x128xbf16>, vector<2x128xf32> -> vector<2x128xf32>
    %66 = arith.addf %61, %65 : vector<2x128xf32>
    %67 = vector.extract_strided_slice %15 {offsets = [20, 0], sizes = [2, 128], strides = [1, 1]} : vector<32x128xbf16> to vector<2x128xbf16>
    %c10 = arith.constant 10 : index
    %c0_38 = arith.constant 0 : index
    %c0_39 = arith.constant 0 : index
    %68 = vector.load %arg4[%c10, %c0_38, %c0_39] : memref<16x128x128xbf16, #tpu.memory_space<vmem>>, vector<1x128x128xbf16>
    %69 = vector.shape_cast %68 : vector<1x128x128xbf16> to vector<128x128xbf16>
    %cst_40 = arith.constant dense<0.000000e+00> : vector<2x128xf32>
    %70 = tpu.matmul %67, %69, %cst_40 {dimension_numbers = #tpu.dot_dimension_numbers<[1], [0], [0], [1], [0, 0, 1, 1], [], []>} : vector<2x128xbf16>, vector<128x128xbf16>, vector<2x128xf32> -> vector<2x128xf32>
    %71 = arith.addf %66, %70 : vector<2x128xf32>
    %72 = vector.extract_strided_slice %15 {offsets = [22, 0], sizes = [2, 128], strides = [1, 1]} : vector<32x128xbf16> to vector<2x128xbf16>
    %c11 = arith.constant 11 : index
    %c0_41 = arith.constant 0 : index
    %c0_42 = arith.constant 0 : index
    %73 = vector.load %arg4[%c11, %c0_41, %c0_42] : memref<16x128x128xbf16, #tpu.memory_space<vmem>>, vector<1x128x128xbf16>
    %74 = vector.shape_cast %73 : vector<1x128x128xbf16> to vector<128x128xbf16>
    %cst_43 = arith.constant dense<0.000000e+00> : vector<2x128xf32>
    %75 = tpu.matmul %72, %74, %cst_43 {dimension_numbers = #tpu.dot_dimension_numbers<[1], [0], [0], [1], [0, 0, 1, 1], [], []>} : vector<2x128xbf16>, vector<128x128xbf16>, vector<2x128xf32> -> vector<2x128xf32>
    %76 = arith.addf %71, %75 : vector<2x128xf32>
    %77 = vector.extract_strided_slice %15 {offsets = [24, 0], sizes = [2, 128], strides = [1, 1]} : vector<32x128xbf16> to vector<2x128xbf16>
    %c12 = arith.constant 12 : index
    %c0_44 = arith.constant 0 : index
    %c0_45 = arith.constant 0 : index
    %78 = vector.load %arg4[%c12, %c0_44, %c0_45] : memref<16x128x128xbf16, #tpu.memory_space<vmem>>, vector<1x128x128xbf16>
    %79 = vector.shape_cast %78 : vector<1x128x128xbf16> to vector<128x128xbf16>
    %cst_46 = arith.constant dense<0.000000e+00> : vector<2x128xf32>
    %80 = tpu.matmul %77, %79, %cst_46 {dimension_numbers = #tpu.dot_dimension_numbers<[1], [0], [0], [1], [0, 0, 1, 1], [], []>} : vector<2x128xbf16>, vector<128x128xbf16>, vector<2x128xf32> -> vector<2x128xf32>
    %81 = arith.addf %76, %80 : vector<2x128xf32>
    %82 = vector.extract_strided_slice %15 {offsets = [26, 0], sizes = [2, 128], strides = [1, 1]} : vector<32x128xbf16> to vector<2x128xbf16>
    %c13 = arith.constant 13 : index
    %c0_47 = arith.constant 0 : index
    %c0_48 = arith.constant 0 : index
    %83 = vector.load %arg4[%c13, %c0_47, %c0_48] : memref<16x128x128xbf16, #tpu.memory_space<vmem>>, vector<1x128x128xbf16>
    %84 = vector.shape_cast %83 : vector<1x128x128xbf16> to vector<128x128xbf16>
    %cst_49 = arith.constant dense<0.000000e+00> : vector<2x128xf32>
    %85 = tpu.matmul %82, %84, %cst_49 {dimension_numbers = #tpu.dot_dimension_numbers<[1], [0], [0], [1], [0, 0, 1, 1], [], []>} : vector<2x128xbf16>, vector<128x128xbf16>, vector<2x128xf32> -> vector<2x128xf32>
    %86 = arith.addf %81, %85 : vector<2x128xf32>
    %87 = vector.extract_strided_slice %15 {offsets = [28, 0], sizes = [2, 128], strides = [1, 1]} : vector<32x128xbf16> to vector<2x128xbf16>
    %c14 = arith.constant 14 : index
    %c0_50 = arith.constant 0 : index
    %c0_51 = arith.constant 0 : index
    %88 = vector.load %arg4[%c14, %c0_50, %c0_51] : memref<16x128x128xbf16, #tpu.memory_space<vmem>>, vector<1x128x128xbf16>
    %89 = vector.shape_cast %88 : vector<1x128x128xbf16> to vector<128x128xbf16>
    %cst_52 = arith.constant dense<0.000000e+00> : vector<2x128xf32>
    %90 = tpu.matmul %87, %89, %cst_52 {dimension_numbers = #tpu.dot_dimension_numbers<[1], [0], [0], [1], [0, 0, 1, 1], [], []>} : vector<2x128xbf16>, vector<128x128xbf16>, vector<2x128xf32> -> vector<2x128xf32>
    %91 = arith.addf %86, %90 : vector<2x128xf32>
    %92 = vector.extract_strided_slice %15 {offsets = [30, 0], sizes = [2, 128], strides = [1, 1]} : vector<32x128xbf16> to vector<2x128xbf16>
    %c15 = arith.constant 15 : index
    %c0_53 = arith.constant 0 : index
    %c0_54 = arith.constant 0 : index
    %93 = vector.load %arg4[%c15, %c0_53, %c0_54] : memref<16x128x128xbf16, #tpu.memory_space<vmem>>, vector<1x128x128xbf16>
    %94 = vector.shape_cast %93 : vector<1x128x128xbf16> to vector<128x128xbf16>
    %cst_55 = arith.constant dense<0.000000e+00> : vector<2x128xf32>
    %95 = tpu.matmul %92, %94, %cst_55 {dimension_numbers = #tpu.dot_dimension_numbers<[1], [0], [0], [1], [0, 0, 1, 1], [], []>} : vector<2x128xbf16>, vector<128x128xbf16>, vector<2x128xf32> -> vector<2x128xf32>
    %96 = arith.addf %91, %95 : vector<2x128xf32>
    %c0_56 = arith.constant 0 : index
    %c0_57 = arith.constant 0 : index
    %97 = vector.load %arg5[%c0_56, %c0_57] : memref<1x128xf32, #tpu.memory_space<vmem>>, vector<1x128xf32>
    %98 = vector.broadcast %97 : vector<1x128xf32> to vector<2x128xf32>
    %99 = arith.addf %96, %98 : vector<2x128xf32>
    %cst_58 = arith.constant 0.000000e+00 : f32
    %100 = vector.broadcast %cst_58 : f32 to vector<2x128xf32>
    %101 = arith.maximumf %99, %100 : vector<2x128xf32>
    %102 = arith.truncf %101 : vector<2x128xf32> to vector<2x128xbf16>
    %c0_59 = arith.constant 0 : index
    %c0_60 = arith.constant 0 : index
    %103 = vector.load %arg6[%c0_59, %c0_60] : memref<128x128xbf16, #tpu.memory_space<vmem>>, vector<128x128xbf16>
    %cst_61 = arith.constant dense<0.000000e+00> : vector<2x128xf32>
    %104 = tpu.matmul %102, %103, %cst_61 {dimension_numbers = #tpu.dot_dimension_numbers<[1], [0], [0], [1], [0, 0, 1, 1], [], []>} : vector<2x128xbf16>, vector<128x128xbf16>, vector<2x128xf32> -> vector<2x128xf32>
    %c0_62 = arith.constant 0 : index
    %c0_63 = arith.constant 0 : index
    %105 = vector.load %arg7[%c0_62, %c0_63] : memref<1x128xf32, #tpu.memory_space<vmem>>, vector<1x128xf32>
    %106 = vector.broadcast %105 : vector<1x128xf32> to vector<2x128xf32>
    %107 = arith.addf %104, %106 : vector<2x128xf32>
    %cst_64 = arith.constant dense<0xFF800000> : vector<2xf32>
    %108 = vector.multi_reduction <maximumf>, %107, %cst_64 [1] : vector<2x128xf32> to vector<2xf32>
    %109 = vector.shape_cast %108 : vector<2xf32> to vector<2x1xf32>
    %110 = vector.broadcast %109 : vector<2x1xf32> to vector<2x128xf32>
    %111 = arith.subf %107, %110 : vector<2x128xf32>
    %112 = math.exp %111 : vector<2x128xf32>
    %cst_65 = arith.constant dense<0.000000e+00> : vector<2xf32>
    %113 = vector.multi_reduction <add>, %112, %cst_65 [1] : vector<2x128xf32> to vector<2xf32>
    %114 = vector.shape_cast %113 : vector<2xf32> to vector<2x1xf32>
    %115 = math.log %114 : vector<2x1xf32>
    %116 = vector.broadcast %115 : vector<2x1xf32> to vector<2x128xf32>
    %117 = arith.subf %111, %116 : vector<2x128xf32>
    %c0_66 = arith.constant 0 : index
    %c0_67 = arith.constant 0 : index
    %118 = vector.load %arg8[%c0_66, %c0_67] : memref<2x128xf32, #tpu.memory_space<vmem>>, vector<2x128xf32>
    tpu.vector_store %arg8[%c0_66, %c0_67], %117 {strides = array<i32>} : memref<2x128xf32, #tpu.memory_space<vmem>>, vector<2x128xf32>,
    return
  }
  func.func @transform_0(%arg0: i32) -> (i32, i32) {
    %c0_i32 = arith.constant 0 : i32
    %c0_i32_0 = arith.constant 0 : i32
    %c0_i32_1 = arith.constant 0 : i32
    return %c0_i32, %c0_i32_0 : i32, i32
  }
  func.func @transform_1(%arg0: i32) -> (i32, i32) {
    %c0_i32 = arith.constant 0 : i32
    %c0_i32_0 = arith.constant 0 : i32
    %c0_i32_1 = arith.constant 0 : i32
    return %c0_i32, %c0_i32_0 : i32, i32
  }
  func.func @transform_2(%arg0: i32) -> (i32, i32) {
    %c0_i32 = arith.constant 0 : i32
    %c0_i32_0 = arith.constant 0 : i32
    %c0_i32_1 = arith.constant 0 : i32
    return %c0_i32, %c0_i32_0 : i32, i32
  }
  func.func @transform_3(%arg0: i32) -> (i32, i32, i32) {
    %c0_i32 = arith.constant 0 : i32
    %c0_i32_0 = arith.constant 0 : i32
    %c0_i32_1 = arith.constant 0 : i32
    %c0_i32_2 = arith.constant 0 : i32
    return %c0_i32, %c0_i32_0, %c0_i32_1 : i32, i32, i32
  }
  func.func @transform_4(%arg0: i32) -> (i32, i32) {
    %c0_i32 = arith.constant 0 : i32
    %c0_i32_0 = arith.constant 0 : i32
    %c0_i32_1 = arith.constant 0 : i32
    return %c0_i32, %c0_i32_0 : i32, i32
  }
  func.func @transform_5(%arg0: i32) -> (i32, i32) {
    %c0_i32 = arith.constant 0 : i32
    %c0_i32_0 = arith.constant 0 : i32
    %c0_i32_1 = arith.constant 0 : i32
    return %c0_i32, %c0_i32_0 : i32, i32
  }
  func.func @transform_6(%arg0: i32) -> (i32, i32) {
    %c0_i32 = arith.constant 0 : i32
    %c0_i32_0 = arith.constant 0 : i32
    %c0_i32_1 = arith.constant 0 : i32
    return %c0_i32, %c0_i32_0 : i32, i32
  }
  func.func @transform_7(%arg0: i32) -> (i32, i32) {
    %c0_i32 = arith.constant 0 : i32
    %c0_i32_0 = arith.constant 0 : i32
    %c0_i32_1 = arith.constant 0 : i32
    return %c0_i32, %c0_i32_0 : i32, i32
  }
}

</mosaic_0001>

<bundles_post_ra>
// kernel: net_forward.2
= control target key start
LH: loop header
LB: loop body
LE: loop exit
PB: predicated region body
PF: predicated region fallthrough
CT: control target
= control target key end

     0   :  { %vm754_vm0 = vcmask 1043456   ;;  %vm755_vm1 = vcmask 1044480   ;;  %v2476_v1 = vmov 65535   ;;  %vm537_vm2 = vcmask 203776   ;;  %s3102_s1 = inlined_call_operand.vmem [shape: bf16[25,128], index: 1, kind: input, shape index: {}]   ;;  %s3103_s0 = inlined_call_operand.vmem [shape: bf16[4,288,25], index: 0, kind: input, shape index: {}]   ;;  %s3104_s2 = inlined_call_operand.vmem [shape: f32[1,128], index: 2, kind: input, shape index: {}]   ;;  %s3105_s3 = inlined_call_operand.vmem [shape: bf16[288,128], index: 3, kind: output, shape index: {}]  }
   0x1   :  { %v2402_v0 = vld [vmem:[%s3102_s1 + $0x8] sm:$0x1f]   ;;  %v756_v2 = vsel %vm754_vm0, 4294967295, %v2476_v1  ;;  %v2404_v4 = vld [vmem:[%s3103_s0] sm:$0xff]   ;;  %v2408_v10 = vld [vmem:[%s3103_s0 + $0x10] sm:$0xff]  }
   0x2   :  { %v757_v3 = vsel %vm755_vm1, %v756_v2, 0  ;;  %v2403_v6 = vld [vmem:[%s3102_s1] sm:$0xff]   ;;  %2253 = vmatprep.mubr.msk.bf16.mxu0 %vm537_vm2, %v2404_v4  ;;  %v2406_v8 = vld [vmem:[%s3103_s0 + $0x8] sm:$0xff]   ;;  %v2409_v11 = vld [vmem:[%s3103_s0 + $0x130] sm:$0xff]  }
   0x3   :  { %v759_v5 = vand.u32 %v2402_v0, %v757_v3  ;;  %v2405_v7 = vld [vmem:[%s3103_s0 + $0x120] sm:$0xff]   ;;  %v2407_v9 = vld [vmem:[%s3103_s0 + $0x128] sm:$0xff]   ;;  %v2410_v12 = vld [vmem:[%s3103_s0 + $0x18] sm:$0xff]  }
   0x4   :  { %2325 = vmatprep.mubr.msk.bf16.mxu1 %vm537_vm2, %v2405_v7  ;;  %v2411_v13 = vld [vmem:[%s3103_s0 + $0x138] sm:$0xff]   ;;  %v2412_v14 = vld [vmem:[%s3103_s0 + $0x20] sm:$0xff]   ;;  %v2414_v16 = vld [vmem:[%s3103_s0 + $0x28] sm:$0xff]  }
   0x5   :  { %2249 = vmatprep.subr.bf16.mxu0 %v759_v5  ;;  %2397 = vmatprep.subr.bf16.mxu1 %v759_v5  ;;  %v2413_v15 = vld [vmem:[%s3103_s0 + $0x140] sm:$0xff]   ;;  %v2415_v17 = vld [vmem:[%s3103_s0 + $0x148] sm:$0xff]   ;;  %v2416_v18 = vld [vmem:[%s3103_s0 + $0x30] sm:$0xff]  }
   0x6   :  { %2250 = vmatpush3.bf16.msra.mxu0 %v759_v5  ;;  %2399 = vmatpush3.bf16.msra.mxu1 %v759_v5  ;;  %v2417_v19 = vld [vmem:[%s3103_s0 + $0x150] sm:$0xff]   ;;  %v2418_v20 = vld [vmem:[%s3103_s0 + $0x38] sm:$0xff]   ;;  %v2420_v22 = vld [vmem:[%s3103_s0 + $0x40] sm:$0xff]  }
   0x7   :  { %2251 = vmatprep.subr.bf16.mxu0 %v2403_v6  ;;  %2398 = vmatprep.subr.bf16.mxu1 %v2403_v6  ;;  %v2419_v21 = vld [vmem:[%s3103_s0 + $0x158] sm:$0xff]   ;;  %v2421_v23 = vld [vmem:[%s3103_s0 + $0x160] sm:$0xff]   ;;  %v2422_v24 = vld [vmem:[%s3103_s0 + $0x48] sm:$0xff]  }
   0x8   :  { %v2423_v25 = vld [vmem:[%s3103_s0 + $0x168] sm:$0xff]   ;;  %v2424_v26 = vld [vmem:[%s3103_s0 + $0x50] sm:$0xff]   ;;  %v2426_v28 = vld [vmem:[%s3103_s0 + $0x58] sm:$0xff]  }
   0x9   :  { %v2425_v27 = vld [vmem:[%s3103_s0 + $0x170] sm:$0xff]   ;;  %v2427_v29 = vld [vmem:[%s3103_s0 + $0x178] sm:$0xff]   ;;  %v2428_v30 = vld [vmem:[%s3103_s0 + $0x60] sm:$0xff]  }
   0xa   :  { %2252 = vmatpush3.bf16.msra.mxu0 %v2403_v6  ;;  %2400 = vmatpush3.bf16.msra.mxu1 %v2403_v6  ;;  %v2429_v31 = vld [vmem:[%s3103_s0 + $0x180] sm:$0xff]   ;;  %v2430_v32 = vld [vmem:[%s3103_s0 + $0x68] sm:$0xff]   ;;  %v2432_v34 = vld [vmem:[%s3103_s0 + $0x70] sm:$0xff]  }
   0xb   :  { %v2431_v33 = vld [vmem:[%s3103_s0 + $0x188] sm:$0xff]   ;;  %v2433_v35 = vld [vmem:[%s3103_s0 + $0x190] sm:$0xff]   ;;  %v2434_v36 = vld [vmem:[%s3103_s0 + $0x78] sm:$0xff]  }
   0xc   :  { %v2435_v37 = vld [vmem:[%s3103_s0 + $0x198] sm:$0xff]   ;;  %v2436_v38 = vld [vmem:[%s3103_s0 + $0x80] sm:$0xff]   ;;  %v2438_v40 = vld [vmem:[%s3103_s0 + $0x88] sm:$0xff]  }
   0xd   :  { %2254 = vmatmul.mubr.msk.bf16.vlgmr.msra.gmra.mxu0 %vm537_vm2, %v2406_v8  ;;  %2326 = vmatmul.mubr.msk.bf16.vlgmr.msra.gmra.mxu1 %vm537_vm2, %v2407_v9  ;;  %v2437_v39 = vld [vmem:[%s3103_s0 + $0x1a0] sm:$0xff]   ;;  %v2439_v41 = vld [vmem:[%s3103_s0 + $0x1a8] sm:$0xff]   ;;  %v2440_v42 = vld [vmem:[%s3103_s0 + $0x90] sm:$0xff]  }
   0xe   :  { %2257 = vmatprep.mubr.msk.bf16.mxu0 %vm537_vm2, %v2408_v10  ;;  %2329 = vmatprep.mubr.msk.bf16.mxu1 %vm537_vm2, %v2409_v11  ;;  %v2441_v43 = vld [vmem:[%s3103_s0 + $0x1b0] sm:$0xff]   ;;  %v2442_v44 = vld [vmem:[%s3103_s0 + $0x98] sm:$0xff]   ;;  %v2444_v46 = vld [vmem:[%s3103_s0 + $0xa0] sm:$0xff]  }
   0xf   :  { %v2443_v45 = vld [vmem:[%s3103_s0 + $0x1b8] sm:$0xff]   ;;  %v2445_v47 = vld [vmem:[%s3103_s0 + $0x1c0] sm:$0xff]   ;;  %v2446_v48 = vld [vmem:[%s3103_s0 + $0xa8] sm:$0xff]  }
  0x10   :  { %v2447_v49 = vld [vmem:[%s3103_s0 + $0x1c8] sm:$0xff]   ;;  %v2448_v50 = vld [vmem:[%s3103_s0 + $0xb0] sm:$0xff]   ;;  %v2450_v52 = vld [vmem:[%s3103_s0 + $0xb8] sm:$0xff]  }
  0x11   :  { %v2449_v51 = vld [vmem:[%s3103_s0 + $0x1d0] sm:$0xff]   ;;  %v2451_v53 = vld [vmem:[%s3103_s0 + $0x1d8] sm:$0xff]   ;;  %v2452_v54 = vld [vmem:[%s3103_s0 + $0xc0] sm:$0xff]  }
  0x12   :  { %v2453_v55 = vld [vmem:[%s3103_s0 + $0x1e0] sm:$0xff]   ;;  %v2454_v56 = vld [vmem:[%s3103_s0 + $0xc8] sm:$0xff]   ;;  %v2456_v58 = vld [vmem:[%s3103_s0 + $0xd0] sm:$0xff]  }
  0x13   :  { %v2455_v57 = vld [vmem:[%s3103_s0 + $0x1e8] sm:$0xff]   ;;  %v2457_v59 = vld [vmem:[%s3103_s0 + $0x1f0] sm:$0xff]   ;;  %v2458_v60 = vld [vmem:[%s3103_s0 + $0xd8] sm:$0xff]  }
  0x14   :  { %v2459_v61 = vld [vmem:[%s3103_s0 + $0x1f8] sm:$0xff]   ;;  %v2460_v62 = vld [vmem:[%s3103_s0 + $0xe0] sm:$0xff]   ;;  %v2462_v0 = vld [vmem:[%s3103_s0 + $0xe8] sm:$0xff]  }
  0x15   :  { %2258 = vmatmul.mubr.msk.bf16.gmra.mxu0 %vm537_vm2, %v2410_v12  ;;  %2330 = vmatmul.mubr.msk.bf16.gmra.mxu1 %vm537_vm2, %v2411_v13  ;;  %v2461_v63 = vld [vmem:[%s3103_s0 + $0x200] sm:$0xff]   ;;  %v2463_v1 = vld [vmem:[%s3103_s0 + $0x208] sm:$0xff]   ;;  %v2464_v2 = vld [vmem:[%s3103_s0 + $0xf0] sm:$0xff]  }
  0x16   :  { %2261 = vmatprep.mubr.msk.bf16.mxu0 %vm537_vm2, %v2412_v14  ;;  %2333 = vmatprep.mubr.msk.bf16.mxu1 %vm537_vm2, %v2413_v15  ;;  %v2465_v3 = vld [vmem:[%s3103_s0 + $0x210] sm:$0xff]   ;;  %v2466_v4 = vld [vmem:[%s3103_s0 + $0xf8] sm:$0xff]   ;;  %v2468_v6 = vld [vmem:[%s3103_s0 + $0x100] sm:$0xff]  }
  0x17   :  { %v2467_v5 = vld [vmem:[%s3103_s0 + $0x218] sm:$0xff]   ;;  %v2469_v7 = vld [vmem:[%s3103_s0 + $0x220] sm:$0xff]   ;;  %v2470_v8 = vld [vmem:[%s3103_s0 + $0x108] sm:$0xff]  }
  0x18   :  { %v2471_v9 = vld [vmem:[%s3103_s0 + $0x228] sm:$0xff]   ;;  %v2472_v10 = vld [vmem:[%s3103_s0 + $0x110] sm:$0xff]   ;;  %v2474_v12 = vld [vmem:[%s3103_s0 + $0x118] sm:$0xff]  }
  0x19   :  { %v2473_v11 = vld [vmem:[%s3103_s0 + $0x230] sm:$0xff]   ;;  %v2475_v13 = vld [vmem:[%s3103_s0 + $0x238] sm:$0xff]  }
  0x1d   :  { %2262 = vmatmul.mubr.msk.bf16.gmra.mxu0 %vm537_vm2, %v2414_v16  ;;  %2334 = vmatmul.mubr.msk.bf16.gmra.mxu1 %vm537_vm2, %v2415_v17 }
  0x1e   :  { %2265 = vmatprep.mubr.msk.bf16.mxu0 %vm537_vm2, %v2416_v18  ;;  %2337 = vmatprep.mubr.msk.bf16.mxu1 %vm537_vm2, %v2417_v19 }
  0x25   :  { %2266 = vmatmul.mubr.msk.bf16.gmra.mxu0 %vm537_vm2, %v2418_v20  ;;  %2338 = vmatmul.mubr.msk.bf16.gmra.mxu1 %vm537_vm2, %v2419_v21 }
  0x26   :  { %2269 = vmatprep.mubr.msk.bf16.mxu0 %vm537_vm2, %v2420_v22  ;;  %2341 = vmatprep.mubr.msk.bf16.mxu1 %vm537_vm2, %v2421_v23 }
  0x2d   :  { %2270 = vmatmul.mubr.msk.bf16.gmra.mxu0 %vm537_vm2, %v2422_v24  ;;  %2342 = vmatmul.mubr.msk.bf16.gmra.mxu1 %vm537_vm2, %v2423_v25 }
  0x2e   :  { %2273 = vmatprep.mubr.msk.bf16.mxu0 %vm537_vm2, %v2424_v26  ;;  %2345 = vmatprep.mubr.msk.bf16.mxu1 %vm537_vm2, %v2425_v27 }
  0x35   :  { %2274 = vmatmul.mubr.msk.bf16.gmra.mxu0 %vm537_vm2, %v2426_v28  ;;  %2346 = vmatmul.mubr.msk.bf16.gmra.mxu1 %vm537_vm2, %v2427_v29 }
  0x36   :  { %2277 = vmatprep.mubr.msk.bf16.mxu0 %vm537_vm2, %v2428_v30  ;;  %2349 = vmatprep.mubr.msk.bf16.mxu1 %vm537_vm2, %v2429_v31 }
  0x3d   :  { %2278 = vmatmul.mubr.msk.bf16.gmra.mxu0 %vm537_vm2, %v2430_v32  ;;  %2350 = vmatmul.mubr.msk.bf16.gmra.mxu1 %vm537_vm2, %v2431_v33 }
  0x3e   :  { %2281 = vmatprep.mubr.msk.bf16.mxu0 %vm537_vm2, %v2432_v34  ;;  %2353 = vmatprep.mubr.msk.bf16.mxu1 %vm537_vm2, %v2433_v35 }
  0x45   :  { %2282 = vmatmul.mubr.msk.bf16.gmra.mxu0 %vm537_vm2, %v2434_v36  ;;  %2354 = vmatmul.mubr.msk.bf16.gmra.mxu1 %vm537_vm2, %v2435_v37 }
  0x46   :  { %2285 = vmatprep.mubr.msk.bf16.mxu0 %vm537_vm2, %v2436_v38  ;;  %2357 = vmatprep.mubr.msk.bf16.mxu1 %vm537_vm2, %v2437_v39 }
  0x4d   :  { %2286 = vmatmul.mubr.msk.bf16.gmra.mxu0 %vm537_vm2, %v2438_v40  ;;  %2358 = vmatmul.mubr.msk.bf16.gmra.mxu1 %vm537_vm2, %v2439_v41 }
  0x4e   :  { %2289 = vmatprep.mubr.msk.bf16.mxu0 %vm537_vm2, %v2440_v42  ;;  %2361 = vmatprep.mubr.msk.bf16.mxu1 %vm537_vm2, %v2441_v43 }
  0x55   :  { %2290 = vmatmul.mubr.msk.bf16.gmra.mxu0 %vm537_vm2, %v2442_v44  ;;  %2362 = vmatmul.mubr.msk.bf16.gmra.mxu1 %vm537_vm2, %v2443_v45 }
  0x56   :  { %2293 = vmatprep.mubr.msk.bf16.mxu0 %vm537_vm2, %v2444_v46  ;;  %2365 = vmatprep.mubr.msk.bf16.mxu1 %vm537_vm2, %v2445_v47 }
  0x5d   :  { %2294 = vmatmul.mubr.msk.bf16.gmra.mxu0 %vm537_vm2, %v2446_v48  ;;  %2366 = vmatmul.mubr.msk.bf16.gmra.mxu1 %vm537_vm2, %v2447_v49 }
  0x5e   :  { %2297 = vmatprep.mubr.msk.bf16.mxu0 %vm537_vm2, %v2448_v50  ;;  %2369 = vmatprep.mubr.msk.bf16.mxu1 %vm537_vm2, %v2449_v51 }
  0x65   :  { %2298 = vmatmul.mubr.msk.bf16.gmra.mxu0 %vm537_vm2, %v2450_v52  ;;  %2370 = vmatmul.mubr.msk.bf16.gmra.mxu1 %vm537_vm2, %v2451_v53 }
  0x66   :  { %2301 = vmatprep.mubr.msk.bf16.mxu0 %vm537_vm2, %v2452_v54  ;;  %2373 = vmatprep.mubr.msk.bf16.mxu1 %vm537_vm2, %v2453_v55 }
  0x6d   :  { %2302 = vmatmul.mubr.msk.bf16.gmra.mxu0 %vm537_vm2, %v2454_v56  ;;  %2374 = vmatmul.mubr.msk.bf16.gmra.mxu1 %vm537_vm2, %v2455_v57 }
  0x6e   :  { %2305 = vmatprep.mubr.msk.bf16.mxu0 %vm537_vm2, %v2456_v58  ;;  %2377 = vmatprep.mubr.msk.bf16.mxu1 %vm537_vm2, %v2457_v59 }
  0x75   :  { %2306 = vmatmul.mubr.msk.bf16.gmra.mxu0 %vm537_vm2, %v2458_v60  ;;  %2378 = vmatmul.mubr.msk.bf16.gmra.mxu1 %vm537_vm2, %v2459_v61 }
  0x76   :  { %2309 = vmatprep.mubr.msk.bf16.mxu0 %vm537_vm2, %v2460_v62  ;;  %2381 = vmatprep.mubr.msk.bf16.mxu1 %vm537_vm2, %v2461_v63 }
  0x7d   :  { %2310 = vmatmul.mubr.msk.bf16.gmra.mxu0 %vm537_vm2, %v2462_v0  ;;  %2382 = vmatmul.mubr.msk.bf16.gmra.mxu1 %vm537_vm2, %v2463_v1 }
  0x7e   :  { %2313 = vmatprep.mubr.msk.bf16.mxu0 %vm537_vm2, %v2464_v2  ;;  %2385 = vmatprep.mubr.msk.bf16.mxu1 %vm537_vm2, %v2465_v3 }
  0x85   :  { %2314 = vmatmul.mubr.msk.bf16.gmra.mxu0 %vm537_vm2, %v2466_v4  ;;  %2386 = vmatmul.mubr.msk.bf16.gmra.mxu1 %vm537_vm2, %v2467_v5 }
  0x86   :  { %2317 = vmatprep.mubr.msk.bf16.mxu0 %vm537_vm2, %v2468_v6  ;;  %2389 = vmatprep.mubr.msk.bf16.mxu1 %vm537_vm2, %v2469_v7 }
  0x8d   :  { %2318 = vmatmul.mubr.msk.bf16.gmra.mxu0 %vm537_vm2, %v2470_v8  ;;  %2390 = vmatmul.mubr.msk.bf16.gmra.mxu1 %vm537_vm2, %v2471_v9 }
  0x8e   :  { %2321 = vmatprep.mubr.msk.bf16.mxu0 %vm537_vm2, %v2472_v10  ;;  %2393 = vmatprep.mubr.msk.bf16.mxu1 %vm537_vm2, %v2473_v11 }
  0x95   :  { %2322 = vmatmul.mubr.msk.bf16.gmra.mxu0 %vm537_vm2, %v2474_v12  ;;  %2394 = vmatmul.mubr.msk.bf16.gmra.mxu1 %vm537_vm2, %v2475_v13 }
  0xcd   :  { %v2791_v14 = vpop.f32.mrf.mxu0  ;;  %v2793_v15 = vpop.f32.mrf.mxu1 }
  0xcf   :  { %v2795_v16 = vpop.f32.mrf.mxu0  ;;  %v2797_v17 = vpop.f32.mrf.mxu1 }
  0xd1   :  { %v2799_v18 = vpop.f32.mrf.mxu0  ;;  %v2801_v19 = vpop.f32.mrf.mxu1 }
  0xd3   :  { %v2803_v20 = vpop.f32.mrf.mxu0  ;;  %v2805_v21 = vpop.f32.mrf.mxu1 }
  0xd5   :  { %v2807_v22 = vpop.f32.mrf.mxu0  ;;  %v2809_v23 = vpop.f32.mrf.mxu1 }
  0xd7   :  { %v2811_v24 = vpop.f32.mrf.mxu0  ;;  %v2813_v25 = vpop.f32.mrf.mxu1 }
  0xd9   :  { %v2815_v26 = vpop.f32.mrf.mxu0  ;;  %v2817_v27 = vpop.f32.mrf.mxu1 }
  0xdb   :  { %v2819_v28 = vpop.f32.mrf.mxu0  ;;  %v2821_v29 = vpop.f32.mrf.mxu1 }
  0xdd   :  { %v2823_v30 = vpop.f32.mrf.mxu0  ;;  %v2825_v31 = vpop.f32.mrf.mxu1 }
  0xdf   :  { %v2827_v32 = vpop.f32.mrf.mxu0  ;;  %v2829_v33 = vpop.f32.mrf.mxu1 }
  0xe1   :  { %v2831_v34 = vpop.f32.mrf.mxu0  ;;  %v2833_v35 = vpop.f32.mrf.mxu1 }
  0xe3   :  { %v2835_v36 = vpop.f32.mrf.mxu0  ;;  %v2837_v37 = vpop.f32.mrf.mxu1 }
  0xe5   :  { %v2839_v38 = vpop.f32.mrf.mxu0  ;;  %v2841_v39 = vpop.f32.mrf.mxu1 }
  0xe7   :  { %v2843_v40 = vpop.f32.mrf.mxu0  ;;  %v2845_v41 = vpop.f32.mrf.mxu1 }
  0xe9   :  { %v2847_v42 = vpop.f32.mrf.mxu0  ;;  %v2849_v43 = vpop.f32.mrf.mxu1 }
  0xeb   :  { %v2851_v44 = vpop.f32.mrf.mxu0  ;;  %v2853_v45 = vpop.f32.mrf.mxu1 }
  0xed   :  { %v2855_v46 = vpop.f32.mrf.mxu0  ;;  %v2857_v47 = vpop.f32.mrf.mxu1 }
  0xef   :  { %v2859_v48 = vpop.f32.mrf.mxu0  ;;  %v2861_v49 = vpop.f32.mrf.mxu1 }
  0xf1   :  { %v2863_v50 = vpop.f32.mrf.mxu0  ;;  %v2865_v51 = vpop.f32.mrf.mxu1 }
  0xf3   :  { %v2867_v52 = vpop.f32.mrf.mxu0  ;;  %v2869_v53 = vpop.f32.mrf.mxu1 }
  0xf5   :  { %v2871_v54 = vpop.f32.mrf.mxu0  ;;  %v2873_v55 = vpop.f32.mrf.mxu1 }
  0xf7   :  { %v2875_v56 = vpop.f32.mrf.mxu0  ;;  %v2877_v57 = vpop.f32.mrf.mxu1 }
  0xf9   :  { %v2879_v58 = vpop.f32.mrf.mxu0  ;;  %v2881_v59 = vpop.f32.mrf.mxu1 }
  0xfb   :  { %v2883_v60 = vpop.f32.mrf.mxu0  ;;  %v2885_v61 = vpop.f32.mrf.mxu1 }
  0xfd   :  { %v2887_v62 = vpop.f32.mrf.mxu0  ;;  %v2889_v63 = vpop.f32.mrf.mxu1 }
  0xfe   :  { %3106 = vst [vmem:[#allocation2_spill] sm:$0xff] %v2889_v63 }
  0xff   :  { %v2891_v0 = vpop.f32.mrf.mxu0  ;;  %v2893_v1 = vpop.f32.mrf.mxu1 }
 0x100   :  { %3107 = vst [vmem:[#allocation3_spill] sm:$0xff] %v2891_v0  ;;  %3108 = vst [vmem:[#allocation4_spill] sm:$0xff] %v2893_v1 }
 0x101   :  { %v2895_v2 = vpop.f32.mrf.mxu0  ;;  %v2897_v3 = vpop.f32.mrf.mxu1 }
 0x102   :  { %3109 = vst [vmem:[#allocation5_spill] sm:$0xff] %v2895_v2  ;;  %3110 = vst [vmem:[#allocation6_spill] sm:$0xff] %v2897_v3 }
 0x103   :  { %v2899_v4 = vpop.f32.mrf.mxu0  ;;  %v2901_v5 = vpop.f32.mrf.mxu1 }
 0x104   :  { %3111 = vst [vmem:[#allocation7_spill] sm:$0xff] %v2899_v4  ;;  %3112 = vst [vmem:[#allocation8_spill] sm:$0xff] %v2901_v5 }
 0x105   :  { %v2903_v6 = vpop.f32.mrf.mxu0  ;;  %v2905_v7 = vpop.f32.mrf.mxu1 }
 0x106   :  { %3113 = vst [vmem:[#allocation9_spill] sm:$0xff] %v2903_v6  ;;  %3114 = vst [vmem:[#allocation10_spill] sm:$0xff] %v2905_v7 }
 0x107   :  { %v2907_v8 = vpop.f32.mrf.mxu0  ;;  %v2909_v9 = vpop.f32.mrf.mxu1 }
 0x108   :  { %3115 = vst [vmem:[#allocation11_spill] sm:$0xff] %v2907_v8  ;;  %3116 = vst [vmem:[#allocation12_spill] sm:$0xff] %v2909_v9 }
 0x109   :  { %v2911_v10 = vpop.f32.mrf.mxu0  ;;  %v2913_v11 = vpop.f32.mrf.mxu1 }
 0x10a   :  { %3117 = vst [vmem:[#allocation13_spill] sm:$0xff] %v2911_v10  ;;  %3118 = vst [vmem:[#allocation14_spill] sm:$0xff] %v2913_v11 }
 0x10b   :  { %v2915_v12 = vpop.f32.mrf.mxu0  ;;  %v2917_v13 = vpop.f32.mrf.mxu1 }
 0x10c   :  { %3119 = vst [vmem:[#allocation15_spill] sm:$0xff] %v2915_v12  ;;  %3120 = vst [vmem:[#allocation16_spill] sm:$0xff] %v2917_v13 }
 0x10d   :  { %v2919_v3 = vpop.f32.mrf.mxu0  ;;  %v2921_v4 = vpop.f32.mrf.mxu1 }
 0x10e   :  { %3121 = vst [vmem:[#allocation17_spill] sm:$0xff] %v2919_v3  ;;  %3122 = vst [vmem:[#allocation18_spill] sm:$0xff] %v2921_v4 }
 0x10f   :  { %v2923_v5 = vpop.f32.mrf.mxu0  ;;  %v2925_v6 = vpop.f32.mrf.mxu1 }
 0x110   :  { %3123 = vst [vmem:[#allocation19_spill] sm:$0xff] %v2923_v5  ;;  %3124 = vst [vmem:[#allocation20_spill] sm:$0xff] %v2925_v6 }
 0x111   :  { %v2927_v7 = vpop.f32.mrf.mxu0  ;;  %v2929_v8 = vpop.f32.mrf.mxu1 }
 0x112   :  { %3125 = vst [vmem:[#allocation21_spill] sm:$0xff] %v2927_v7  ;;  %3126 = vst [vmem:[#allocation22_spill] sm:$0xff] %v2929_v8  ;;  %v2942_v8 = vld [vmem:[%s3104_s2] ss:$0 sm:$0xff] }
 0x113   :  { %v2931_v9 = vpop.f32.mrf.mxu0  ;;  %v2933_v10 = vpop.f32.mrf.mxu1 }
 0x114   :  { %3127 = vst [vmem:[#allocation23_spill] sm:$0xff] %v2931_v9  ;;  %3128 = vst [vmem:[#allocation24_spill] sm:$0xff] %v2933_v10 }
 0x115   :  { %v2291_v11 = vpop.f32.mrf.mxu0  ;;  %v2363_v12 = vpop.f32.mrf.mxu1 }
 0x116   :  { %v1372_v13 = vmax.f32 %v2791_v14, %v2291_v11  ;;  %v1408_v3 = vmax.f32 %v2793_v15, %v2363_v12 }
 0x117   :  { %v939_v2 = vpop.f32.mrf.mxu0  ;;  %v1227_v4 = vpop.f32.mrf.mxu1 }
 0x118   :  { %v1444_v1 = vmax.f32 %v1372_v13, %v1408_v3  ;;  %v1370_v5 = vmax.f32 %v2795_v16, %v939_v2  ;;  %v1406_v6 = vmax.f32 %v2797_v17, %v1227_v4 }
 0x119   :  { %v2292_v9 = vpop.f32.mrf.mxu0  ;;  %v2364_v10 = vpop.f32.mrf.mxu1 }
 0x11a   :  { %v1373_v7 = vmax.f32 %v2799_v18, %v2292_v9  ;;  %v1409_v14 = vmax.f32 %v2801_v19, %v2364_v10  ;;  %v1442_v11 = vmax.f32 %v1370_v5, %v1406_v6  ;;  %v1487_v3 = vadd.f32 %v2942_v8, %v1444_v1 }
 0x11b   :  { %v942_v15 = vpop.f32.mrf.mxu0  ;;  %v1230_v12 = vpop.f32.mrf.mxu1 }
 0x11c   :  { %v1445_v13 = vmax.f32 %v1373_v7, %v1409_v14  ;;  %v1371_v16 = vmax.f32 %v2803_v20, %v942_v15  ;;  %v1407_v17 = vmax.f32 %v2805_v21, %v1230_v12  ;;  %v1485_v19 = vadd.f32 %v2942_v8, %v1442_v11 }
 0x11d   :  { %v2295_v2 = vpop.f32.mrf.mxu0  ;;  %v2367_v4 = vpop.f32.mrf.mxu1  ;;  %v1523_v10 = vmax.f32 %v1487_v3, 0.0 }
 0x11e   :  { %v1488_v0 = vadd.f32 %v2942_v8, %v1445_v13  ;;  %v1376_v63 = vmax.f32 %v2807_v22, %v2295_v2  ;;  %v1412_v18 = vmax.f32 %v2809_v23, %v2367_v4  ;;  %v1443_v5 = vmax.f32 %v1371_v16, %v1407_v17 }
 0x11f   :  { %v955_v6 = vpop.f32.mrf.mxu0  ;;  %v1243_v9 = vpop.f32.mrf.mxu1  ;;  %v1521_v2 = vmax.f32 %v1485_v19, 0.0 }
 0x120   :  { %v1524_v1 = vmax.f32 %v1488_v0, 0.0  ;;  %v1374_v7 = vmax.f32 %v2811_v24, %v955_v6  ;;  %v1410_v20 = vmax.f32 %v2813_v25, %v1243_v9  ;;  %v1486_v21 = vadd.f32 %v2942_v8, %v1443_v5 }
 0x121   :  { %v1448_v14 = vmax.f32 %v1376_v63, %v1412_v18  ;;  %v2296_v15 = vpop.f32.mrf.mxu0  ;;  %v2368_v12 = vpop.f32.mrf.mxu1 }
 0x122   :  { %v2076_v13 = vpack.c.bf16 %v1524_v1, %v1523_v10  ;;  %v1446_v22 = vmax.f32 %v1374_v7, %v1410_v20  ;;  %v1377_v23 = vmax.f32 %v2815_v26, %v2296_v15  ;;  %v1522_v11 = vmax.f32 %v1486_v21, 0.0 }
 0x123   :  { %v1413_v16 = vmax.f32 %v2817_v27, %v2368_v12  ;;  %v958_v17 = vpop.f32.mrf.mxu0  ;;  %v1246_v3 = vpop.f32.mrf.mxu1  ;;  %v1491_v0 = vadd.f32 %v2942_v8, %v1448_v14 }
 0x124   :  { %2158 = vst [vmem:[%s3105_s3 + $0x8] sm:$0xff] %v2076_v13   ;;  %v1375_v24 = vmax.f32 %v2819_v28, %v958_v17  ;;  %v1411_v25 = vmax.f32 %v2821_v29, %v1246_v3  ;;  %v2071_v63 = vpack.c.bf16 %v1522_v11, %v1521_v2  ;;  %v1489_v19 = vadd.f32 %v2942_v8, %v1446_v22 }
 0x125   :  { %v1449_v4 = vmax.f32 %v1377_v23, %v1413_v16  ;;  %v2299_v18 = vpop.f32.mrf.mxu0  ;;  %v2371_v26 = vpop.f32.mrf.mxu1  ;;  %v1527_v20 = vmax.f32 %v1491_v0, 0.0 }
 0x126   :  { %v1447_v5 = vmax.f32 %v1375_v24, %v1411_v25  ;;  %v1380_v27 = vmax.f32 %v2823_v30, %v2299_v18  ;;  %v1416_v6 = vmax.f32 %v2825_v31, %v2371_v26  ;;  %2072 = vst [vmem:[%s3105_s3] sm:$0xff] %v2071_v63   ;;  %v1525_v31 = vmax.f32 %v1489_v19, 0.0 }
 0x127   :  { %v1492_v28 = vadd.f32 %v2942_v8, %v1449_v4  ;;  %v971_v29 = vpop.f32.mrf.mxu0  ;;  %v1259_v9 = vpop.f32.mrf.mxu1 }
 0x128   :  { %v1490_v10 = vadd.f32 %v2942_v8, %v1447_v5  ;;  %v1378_v1 = vmax.f32 %v2827_v32, %v971_v29  ;;  %v1414_v7 = vmax.f32 %v2829_v33, %v1259_v9  ;;  %v1452_v14 = vmax.f32 %v1380_v27, %v1416_v6 }
 0x129   :  { %v1528_v21 = vmax.f32 %v1492_v28, 0.0  ;;  %v2300_v30 = vpop.f32.mrf.mxu0  ;;  %v2372_v15 = vpop.f32.mrf.mxu1 }
 0x12a   :  { %v1526_v12 = vmax.f32 %v1490_v10, 0.0  ;;  %v1381_v13 = vmax.f32 %v2831_v34, %v2300_v30  ;;  %v1450_v23 = vmax.f32 %v1378_v1, %v1414_v7  ;;  %v1417_v2 = vmax.f32 %v2833_v35, %v2372_v15 }
 0x12b   :  { %v2086_v22 = vpack.c.bf16 %v1528_v21, %v1527_v20  ;;  %v974_v11 = vpop.f32.mrf.mxu0  ;;  %v1262_v16 = vpop.f32.mrf.mxu1  ;;  %v1495_v33 = vadd.f32 %v2942_v8, %v1452_v14 }
 0x12c   :  { %v2081_v17 = vpack.c.bf16 %v1526_v12, %v1525_v31  ;;  %v1379_v32 = vmax.f32 %v2835_v36, %v974_v11  ;;  %v1453_v3 = vmax.f32 %v1381_v13, %v1417_v2  ;;  %v1415_v24 = vmax.f32 %v2837_v37, %v1262_v16 }
 0x12d   :  { %2160 = vst [vmem:[%s3105_s3 + $0x18] sm:$0xff] %v2086_v22   ;;  %v2303_v25 = vpop.f32.mrf.mxu0  ;;  %v2375_v34 = vpop.f32.mrf.mxu1  ;;  %v1493_v36 = vadd.f32 %v2942_v8, %v1450_v23  ;;  %v1531_v27 = vmax.f32 %v1495_v33, 0.0 }
 0x12e   :  { %2159 = vst [vmem:[%s3105_s3 + $0x10] sm:$0xff] %v2081_v17   ;;  %v1384_v35 = vmax.f32 %v2839_v38, %v2303_v25  ;;  %v1420_v63 = vmax.f32 %v2841_v39, %v2375_v34  ;;  %v1496_v0 = vadd.f32 %v2942_v8, %v1453_v3  ;;  %v1451_v4 = vmax.f32 %v1379_v32, %v1415_v24 }
 0x12f   :  { %v987_v18 = vpop.f32.mrf.mxu0  ;;  %v1275_v26 = vpop.f32.mrf.mxu1  ;;  %v1529_v10 = vmax.f32 %v1493_v36, 0.0 }
 0x130   :  { %v1456_v19 = vmax.f32 %v1384_v35, %v1420_v63  ;;  %v1382_v37 = vmax.f32 %v2843_v40, %v987_v18  ;;  %v1418_v5 = vmax.f32 %v2845_v41, %v1275_v26  ;;  %v1532_v6 = vmax.f32 %v1496_v0, 0.0 }
 0x131   :  { %v1494_v28 = vadd.f32 %v2942_v8, %v1451_v4  ;;  %v2304_v29 = vpop.f32.mrf.mxu0  ;;  %v2376_v38 = vpop.f32.mrf.mxu1 }
 0x132   :  { %v1385_v39 = vmax.f32 %v2847_v42, %v2304_v29  ;;  %v1421_v9 = vmax.f32 %v2849_v43, %v2376_v38  ;;  %v2096_v1 = vpack.c.bf16 %v1532_v6, %v1531_v27  ;;  %v1454_v20 = vmax.f32 %v1382_v37, %v1418_v5 }
 0x133   :  { %v1530_v7 = vmax.f32 %v1494_v28, 0.0  ;;  %v990_v21 = vpop.f32.mrf.mxu0  ;;  %v1278_v14 = vpop.f32.mrf.mxu1  ;;  %v1499_v40 = vadd.f32 %v2942_v8, %v1456_v19 }
 0x134   :  { %v1457_v30 = vmax.f32 %v1385_v39, %v1421_v9  ;;  %v1383_v41 = vmax.f32 %v2851_v44, %v990_v21  ;;  %2162 = vst [vmem:[%s3105_s3 + $0x28] sm:$0xff] %v2096_v1   ;;  %v1419_v42 = vmax.f32 %v2853_v45, %v1278_v14  ;;  %v1497_v44 = vadd.f32 %v2942_v8, %v1454_v20 }
 0x135   :  { %v2091_v15 = vpack.c.bf16 %v1530_v7, %v1529_v10  ;;  %v2307_v31 = vpop.f32.mrf.mxu0  ;;  %v2379_v43 = vpop.f32.mrf.mxu1  ;;  %v1535_v16 = vmax.f32 %v1499_v40, 0.0 }
 0x136   :  { %v1500_v12 = vadd.f32 %v2942_v8, %v1457_v30  ;;  %v1388_v13 = vmax.f32 %v2855_v46, %v2307_v31  ;;  %v1424_v22 = vmax.f32 %v2857_v47, %v2379_v43  ;;  %v1455_v23 = vmax.f32 %v1383_v41, %v1419_v42 }
 0x137   :  { %2161 = vst [vmem:[%s3105_s3 + $0x20] sm:$0xff] %v2091_v15   ;;  %v1003_v2 = vpop.f32.mrf.mxu0  ;;  %v1291_v11 = vpop.f32.mrf.mxu1  ;;  %v1533_v35 = vmax.f32 %v1497_v44, 0.0 }
 0x138   :  { %v1536_v17 = vmax.f32 %v1500_v12, 0.0  ;;  %v1386_v45 = vmax.f32 %v2859_v48, %v1003_v2  ;;  %v1422_v32 = vmax.f32 %v2861_v49, %v1291_v11  ;;  %v1498_v33 = vadd.f32 %v2942_v8, %v1455_v23 }
 0x139   :  { %v1460_v46 = vmax.f32 %v1388_v13, %v1424_v22  ;;  %v2308_v3 = vpop.f32.mrf.mxu0  ;;  %v2380_v47 = vpop.f32.mrf.mxu1  ;;  %v3129_v13 = vld [vmem:[#allocation2_spill] sm:$0xff] }
 0x13a   :  { %v2106_v24 = vpack.c.bf16 %v1536_v17, %v1535_v16  ;;  %v1458_v25 = vmax.f32 %v1386_v45, %v1422_v32  ;;  %v1389_v34 = vmax.f32 %v2863_v50, %v2308_v3  ;;  %v1534_v63 = vmax.f32 %v1498_v33, 0.0  ;;  %v3130_v17 = vld [vmem:[#allocation3_spill] sm:$0xff]  ;;  %v3131_v45 = vld [vmem:[#allocation4_spill] sm:$0xff] }
 0x13b   :  { %v1425_v36 = vmax.f32 %v2865_v51, %v2380_v47  ;;  %v1006_v0 = vpop.f32.mrf.mxu0  ;;  %v1294_v4 = vpop.f32.mrf.mxu1  ;;  %v1503_v26 = vadd.f32 %v2942_v8, %v1460_v46 }
 0x13c   :  { %2164 = vst [vmem:[%s3105_s3 + $0x38] sm:$0xff] %v2106_v24   ;;  %v1387_v48 = vmax.f32 %v2867_v52, %v1006_v0  ;;  %v1423_v49 = vmax.f32 %v2869_v53, %v1294_v4  ;;  %v2101_v18 = vpack.c.bf16 %v1534_v63, %v1533_v35  ;;  %v1501_v5 = vadd.f32 %v2942_v8, %v1458_v25  ;;  %v3132_v24 = vld [vmem:[#allocation5_spill] sm:$0xff] }
 0x13d   :  { %v1461_v19 = vmax.f32 %v1389_v34, %v1425_v36  ;;  %v2311_v37 = vpop.f32.mrf.mxu0  ;;  %v2383_v50 = vpop.f32.mrf.mxu1  ;;  %v1539_v9 = vmax.f32 %v1503_v26, 0.0  ;;  %v3133_v34 = vld [vmem:[#allocation6_spill] sm:$0xff] }
 0x13e   :  { %v1459_v27 = vmax.f32 %v1387_v48, %v1423_v49  ;;  %v1392_v51 = vmax.f32 %v2871_v54, %v2311_v37  ;;  %v1428_v6 = vmax.f32 %v2873_v55, %v2383_v50  ;;  %2163 = vst [vmem:[%s3105_s3 + $0x30] sm:$0xff] %v2101_v18   ;;  %v1537_v55 = vmax.f32 %v1501_v5, 0.0  ;;  %v3135_v5 = vld [vmem:[#allocation8_spill] sm:$0xff] }
 0x13f   :  { %v1504_v52 = vadd.f32 %v2942_v8, %v1461_v19  ;;  %v1019_v53 = vpop.f32.mrf.mxu0  ;;  %v1307_v28 = vpop.f32.mrf.mxu1  ;;  %v3134_v19 = vld [vmem:[#allocation7_spill] sm:$0xff] }
 0x140   :  { %v1502_v29 = vadd.f32 %v2942_v8, %v1459_v27  ;;  %v1390_v38 = vmax.f32 %v2875_v56, %v1019_v53  ;;  %v1426_v39 = vmax.f32 %v2877_v57, %v1307_v28  ;;  %v1464_v1 = vmax.f32 %v1392_v51, %v1428_v6  ;;  %v3136_v53 = vld [vmem:[#allocation9_spill] sm:$0xff] }
 0x141   :  { %v1540_v10 = vmax.f32 %v1504_v52, 0.0  ;;  %v2312_v54 = vpop.f32.mrf.mxu0  ;;  %v2384_v7 = vpop.f32.mrf.mxu1 }
 0x142   :  { %v1538_v20 = vmax.f32 %v1502_v29, 0.0  ;;  %v1393_v21 = vmax.f32 %v2879_v58, %v2312_v54  ;;  %v1462_v40 = vmax.f32 %v1390_v38, %v1426_v39  ;;  %v1429_v30 = vmax.f32 %v2881_v59, %v2384_v7  ;;  %v3137_v29 = vld [vmem:[#allocation10_spill] sm:$0xff] }
 0x143   :  { %v2116_v14 = vpack.c.bf16 %v1540_v10, %v1539_v9  ;;  %v1022_v41 = vpop.f32.mrf.mxu0  ;;  %v1310_v15 = vpop.f32.mrf.mxu1  ;;  %v1507_v57 = vadd.f32 %v2942_v8, %v1464_v1 }
 0x144   :  { %v2111_v42 = vpack.c.bf16 %v1538_v20, %v1537_v55  ;;  %v1391_v56 = vmax.f32 %v2883_v60, %v1022_v41  ;;  %v1465_v31 = vmax.f32 %v1393_v21, %v1429_v30  ;;  %v1427_v43 = vmax.f32 %v2885_v61, %v1310_v15  ;;  %v3138_v55 = vld [vmem:[#allocation11_spill] sm:$0xff]  ;;  %v3139_v21 = vld [vmem:[#allocation12_spill] sm:$0xff] }
 0x145   :  { %2166 = vst [vmem:[%s3105_s3 + $0x48] sm:$0xff] %v2116_v14   ;;  %v2315_v12 = vpop.f32.mrf.mxu0  ;;  %v2387_v58 = vpop.f32.mrf.mxu1  ;;  %v1505_v60 = vadd.f32 %v2942_v8, %v1462_v40  ;;  %v1543_v33 = vmax.f32 %v1507_v57, 0.0  ;;  %v3140_v57 = vld [vmem:[#allocation13_spill] sm:$0xff] }
 0x146   :  { %2165 = vst [vmem:[%s3105_s3 + $0x40] sm:$0xff] %v2111_v42   ;;  %v1396_v59 = vmax.f32 %v2887_v62, %v2315_v12  ;;  %v1432_v22 = vmax.f32 %v3129_v13, %v2387_v58  ;;  %v1508_v44 = vadd.f32 %v2942_v8, %v1465_v31  ;;  %v1463_v23 = vmax.f32 %v1391_v56, %v1427_v43  ;;  %v3141_v58 = vld [vmem:[#allocation14_spill] sm:$0xff] }
 0x147   :  { %v1035_v2 = vpop.f32.mrf.mxu0  ;;  %v1323_v11 = vpop.f32.mrf.mxu1  ;;  %v1541_v63 = vmax.f32 %v1505_v60, 0.0  ;;  %v3142_v60 = vld [vmem:[#allocation15_spill] sm:$0xff] }
 0x148   :  { %v1468_v16 = vmax.f32 %v1396_v59, %v1432_v22  ;;  %v1394_v61 = vmax.f32 %v3130_v17, %v1035_v2  ;;  %v1430_v32 = vmax.f32 %v3131_v45, %v1323_v11  ;;  %v1544_v46 = vmax.f32 %v1508_v44, 0.0 }
 0x149   :  { %v1506_v3 = vadd.f32 %v2942_v8, %v1463_v23  ;;  %v2316_v47 = vpop.f32.mrf.mxu0  ;;  %v2388_v62 = vpop.f32.mrf.mxu1  ;;  %v3143_v23 = vld [vmem:[#allocation16_spill] sm:$0xff] }
 0x14a   :  { %v1397_v25 = vmax.f32 %v3132_v24, %v2316_v47  ;;  %v1433_v35 = vmax.f32 %v3133_v34, %v2388_v62  ;;  %v2126_v36 = vpack.c.bf16 %v1544_v46, %v1543_v33  ;;  %v1466_v4 = vmax.f32 %v1394_v61, %v1430_v32  ;;  %v3144_v46 = vld [vmem:[#allocation17_spill] sm:$0xff]  ;;  %v3145_v47 = vld [vmem:[#allocation18_spill] sm:$0xff] }
 0x14b   :  { %v1542_v0 = vmax.f32 %v1506_v3, 0.0  ;;  %v1038_v48 = vpop.f32.mrf.mxu0  ;;  %v1326_v49 = vpop.f32.mrf.mxu1  ;;  %v1511_v18 = vadd.f32 %v2942_v8, %v1468_v16 }
 0x14c   :  { %v1469_v26 = vmax.f32 %v1397_v25, %v1433_v35  ;;  %v1395_v37 = vmax.f32 %v3134_v19, %v1038_v48  ;;  %2168 = vst [vmem:[%s3105_s3 + $0x58] sm:$0xff] %v2126_v36   ;;  %v1431_v27 = vmax.f32 %v3135_v5, %v1326_v49  ;;  %v1509_v39 = vadd.f32 %v2942_v8, %v1466_v4  ;;  %v3148_v5 = vld [vmem:[#allocation21_spill] sm:$0xff] }
 0x14d   :  { %v2121_v50 = vpack.c.bf16 %v1542_v0, %v1541_v63  ;;  %v2319_v51 = vpop.f32.mrf.mxu0  ;;  %v2391_v6 = vpop.f32.mrf.mxu1  ;;  %v1547_v54 = vmax.f32 %v1511_v18, 0.0  ;;  %v3146_v63 = vld [vmem:[#allocation19_spill] sm:$0xff]  ;;  %v3147_v0 = vld [vmem:[#allocation20_spill] sm:$0xff] }
 0x14e   :  { %v1512_v52 = vadd.f32 %v2942_v8, %v1469_v26  ;;  %v1400_v28 = vmax.f32 %v3136_v53, %v2319_v51  ;;  %v1436_v38 = vmax.f32 %v3137_v29, %v2391_v6  ;;  %v1467_v9 = vmax.f32 %v1395_v37, %v1431_v27 }
 0x14f   :  { %2167 = vst [vmem:[%s3105_s3 + $0x50] sm:$0xff] %v2121_v50   ;;  %v1051_v10 = vpop.f32.mrf.mxu0  ;;  %v1339_v1 = vpop.f32.mrf.mxu1  ;;  %v1545_v43 = vmax.f32 %v1509_v39, 0.0  ;;  %v3150_v39 = vld [vmem:[#allocation23_spill] sm:$0xff] }
 0x150   :  { %v1548_v7 = vmax.f32 %v1512_v52, 0.0  ;;  %v1398_v20 = vmax.f32 %v3138_v55, %v1051_v10  ;;  %v1434_v14 = vmax.f32 %v3139_v21, %v1339_v1  ;;  %v1510_v40 = vadd.f32 %v2942_v8, %v1467_v9  ;;  %v3149_v52 = vld [vmem:[#allocation22_spill] sm:$0xff] }
 0x151   :  { %v1472_v30 = vmax.f32 %v1400_v28, %v1436_v38  ;;  %v2320_v41 = vpop.f32.mrf.mxu0  ;;  %v2392_v15 = vpop.f32.mrf.mxu1 }
 0x152   :  { %v2136_v42 = vpack.c.bf16 %v1548_v7, %v1547_v54  ;;  %v1470_v56 = vmax.f32 %v1398_v20, %v1434_v14  ;;  %v1401_v31 = vmax.f32 %v3140_v57, %v2320_v41  ;;  %v1546_v12 = vmax.f32 %v1510_v40, 0.0  ;;  %v3151_v54 = vld [vmem:[#allocation24_spill] sm:$0xff] }
 0x153   :  { %v1437_v59 = vmax.f32 %v3141_v58, %v2392_v15  ;;  %v1054_v13 = vpop.f32.mrf.mxu0  ;;  %v1342_v22 = vpop.f32.mrf.mxu1  ;;  %v1515_v16 = vadd.f32 %v2942_v8, %v1472_v30 }
 0x154   :  { %2170 = vst [vmem:[%s3105_s3 + $0x68] sm:$0xff] %v2136_v42   ;;  %v1399_v44 = vmax.f32 %v3142_v60, %v1054_v13  ;;  %v1435_v2 = vmax.f32 %v3143_v23, %v1342_v22  ;;  %v2131_v11 = vpack.c.bf16 %v1546_v12, %v1545_v43  ;;  %v1513_v32 = vadd.f32 %v2942_v8, %v1470_v56 }
 0x155   :  { %v1473_v17 = vmax.f32 %v1401_v31, %v1437_v59  ;;  %v2323_v61 = vpop.f32.mrf.mxu0  ;;  %v2395_v45 = vpop.f32.mrf.mxu1  ;;  %v1551_v48 = vmax.f32 %v1515_v16, 0.0 }
 0x156   :  { %v1471_v33 = vmax.f32 %v1399_v44, %v1435_v2  ;;  %v1404_v3 = vmax.f32 %v3144_v46, %v2323_v61  ;;  %v1440_v62 = vmax.f32 %v3145_v47, %v2395_v45  ;;  %2169 = vst [vmem:[%s3105_s3 + $0x60] sm:$0xff] %v2131_v11   ;;  %v1549_v37 = vmax.f32 %v1513_v32, 0.0 }
 0x157   :  { %v1516_v24 = vadd.f32 %v2942_v8, %v1473_v17  ;;  %v1067_v25 = vpop.f32.mrf.mxu0  ;;  %v1355_v34 = vpop.f32.mrf.mxu1 }
 0x158   :  { %v1514_v35 = vadd.f32 %v2942_v8, %v1471_v33  ;;  %v1402_v36 = vmax.f32 %v3146_v63, %v1067_v25  ;;  %v1438_v4 = vmax.f32 %v3147_v0, %v1355_v34  ;;  %v1476_v18 = vmax.f32 %v1404_v3, %v1440_v62 }
 0x159   :  { %v1552_v49 = vmax.f32 %v1516_v24, 0.0  ;;  %v2324_v26 = vpop.f32.mrf.mxu0  ;;  %v2396_v19 = vpop.f32.mrf.mxu1 }
 0x15a   :  { %v1550_v50 = vmax.f32 %v1514_v35, 0.0  ;;  %v1405_v27 = vmax.f32 %v3148_v5, %v2324_v26  ;;  %v1474_v6 = vmax.f32 %v1402_v36, %v1438_v4  ;;  %v1441_v53 = vmax.f32 %v3149_v52, %v2396_v19 }
 0x15b   :  { %v2146_v51 = vpack.c.bf16 %v1552_v49, %v1551_v48  ;;  %v1070_v28 = vpop.f32.mrf.mxu0  ;;  %v1358_v29 = vpop.f32.mrf.mxu1  ;;  %v1519_v10 = vadd.f32 %v2942_v8, %v1476_v18 }
 0x15c   :  { %v2141_v38 = vpack.c.bf16 %v1550_v50, %v1549_v37  ;;  %v1403_v9 = vmax.f32 %v3150_v39, %v1070_v28  ;;  %v1477_v1 = vmax.f32 %v1405_v27, %v1441_v53  ;;  %v1439_v7 = vmax.f32 %v3151_v54, %v1358_v29 }
 0x15d   :  { %2172 = vst [vmem:[%s3105_s3 + $0x78] sm:$0xff] %v2146_v51   ;;  %v1517_v55 = vadd.f32 %v2942_v8, %v1474_v6  ;;  %v1555_v14 = vmax.f32 %v1519_v10, 0.0 }
 0x15e   :  { %2171 = vst [vmem:[%s3105_s3 + $0x70] sm:$0xff] %v2141_v38   ;;  %v1520_v20 = vadd.f32 %v2942_v8, %v1477_v1  ;;  %v1475_v21 = vmax.f32 %v1403_v9, %v1439_v7 }
 0x15f   :  { %v1553_v41 = vmax.f32 %v1517_v55, 0.0 }
 0x160   :  { %v1556_v40 = vmax.f32 %v1520_v20, 0.0  ;;  %v1518_v30 = vadd.f32 %v2942_v8, %v1475_v21 }
 0x162   :  { %v2156_v15 = vpack.c.bf16 %v1556_v40, %v1555_v14  ;;  %v1554_v42 = vmax.f32 %v1518_v30, 0.0 }
 0x164   :  { %2174 = vst [vmem:[%s3105_s3 + $0x88] sm:$0xff] %v2156_v15   ;;  %v2151_v56 = vpack.c.bf16 %v1554_v42, %v1553_v41 }
 0x166   :  { %2173 = vst [vmem:[%s3105_s3 + $0x80] sm:$0xff] %v2151_v56  }

// kernel: net_forward.3
= control target key start
LH: loop header
LB: loop body
LE: loop exit
PB: predicated region body
PF: predicated region fallthrough
CT: control target
= control target key end

     0   :  { %vm268_vm0 = vcmask 1044480   ;;  %vm243_vm1 = vcmask 998400   ;;  %s4209_s0 = inlined_call_operand.vmem [shape: bf16[128,250], index: 0, kind: input, shape index: {}]   ;;  %s4210_s1 = inlined_call_operand.vmem [shape: bf16[250,128], index: 1, kind: input, shape index: {}]   ;;  %s4211_s2 = inlined_call_operand.vmem [shape: f32[1,128], index: 2, kind: input, shape index: {}]   ;;  %s4212_s3 = inlined_call_operand.vmem [shape: bf16[16,128,128], index: 3, kind: input, shape index: {}]   ;;  %s4213_s4 = inlined_call_operand.vmem [shape: f32[1,128], index: 4, kind: input, shape index: {}]   ;;  %s4214_s5 = inlined_call_operand.vmem [shape: bf16[128,128], index: 5, kind: input, shape index: {}]   ;;  %s4215_s6 = inlined_call_operand.vmem [shape: f32[1,128], index: 6, kind: input, shape index: {}]   ;;  %s4216_s7 = inlined_call_operand.hbm [shape: f32[2,128], index: 7, kind: output, shape index: {}]  }
   0x1   :  { %v3250_v0 = vld [vmem:[%s4210_s1 + $0x78] sm:$0x1f]   ;;  %v3252_v2 = vld [vmem:[%s4210_s1 + $0x70] sm:$0xff]   ;;  %v3254_v4 = vld [vmem:[%s4210_s1 + $0x68] sm:$0xff]  }
   0x2   :  { %v3251_v1 = vld [vmem:[%s4210_s1 + $0x38] sm:$0xff]   ;;  %3246 = vmatprep.subr.msk.bf16.mxu0 %vm268_vm0, %v3250_v0  ;;  %v3253_v3 = vld [vmem:[%s4210_s1 + $0x30] sm:$0xff]   ;;  %v3255_v5 = vld [vmem:[%s4210_s1 + $0x28] sm:$0xff]  }
   0x3   :  { %2690 = vmatpush3.bf16.msra.mxu0 %v3251_v1  ;;  %v3256_v6 = vld [vmem:[%s4210_s1 + $0x60] sm:$0xff]   ;;  %v3258_v8 = vld [vmem:[%s4210_s1 + $0x58] sm:$0xff]   ;;  %v3260_v10 = vld [vmem:[%s4210_s1 + $0x50] sm:$0xff]  }
   0x4   :  { %2691 = vmatprep.subr.bf16.mxu0 %v3252_v2  ;;  %v3257_v7 = vld [vmem:[%s4210_s1 + $0x20] sm:$0xff]   ;;  %v3259_v9 = vld [vmem:[%s4210_s1 + $0x18] sm:$0xff]   ;;  %v3261_v12 = vld [vmem:[%s4210_s1 + $0x10] sm:$0xff]  }
   0x5   :  { %v3268_v11 = vld [vmem:[%s4209_s0 + $0x4] ss:$8 sps:$4 sm:$0xff]   ;;  %v3266_v17 = vld [vmem:[%s4209_s0] ss:$8 sps:$4 sm:$0xff]   ;;  %v3269_v18 = vld [vmem:[%s4209_s0 + $0x14] ss:$8 sps:$4 sm:$0xff]  }
   0x6   :  { %2302 = vmatprep.mubr.msk.bf16.mxu0 %vm243_vm1, %v3268_v11  ;;  %v3262_v13 = vld [vmem:[%s4210_s1 + $0x48] sm:$0xff]   ;;  %v3264_v15 = vld [vmem:[%s4210_s1 + $0x40] sm:$0xff]   ;;  %v3271_v19 = vld [vmem:[%s4209_s0 + $0x10] ss:$8 sps:$4 sm:$0xff]  }
   0x7   :  { %2692 = vmatpush3.bf16.msra.mxu0 %v3253_v3  ;;  %v3263_v14 = vld [vmem:[%s4210_s1 + $0x8] sm:$0xff]   ;;  %v3265_v16 = vld [vmem:[%s4210_s1] sm:$0xff]   ;;  %v3275_v22 = vld [vmem:[%s4209_s0 + $0x34] ss:$8 sps:$4 sm:$0xff]  }
   0x8   :  { %2693 = vmatprep.subr.bf16.mxu0 %v3254_v4  ;;  %v3272_v20 = vld [vmem:[%s4209_s0 + $0x24] ss:$8 sps:$4 sm:$0xff]   ;;  %v3274_v21 = vld [vmem:[%s4209_s0 + $0x20] ss:$8 sps:$4 sm:$0xff]   ;;  %v3277_v23 = vld [vmem:[%s4209_s0 + $0x30] ss:$8 sps:$4 sm:$0xff]  }
   0x9   :  { %v3278_v24 = vld [vmem:[%s4209_s0 + $0x44] ss:$8 sps:$4 sm:$0xff]   ;;  %v3280_v25 = vld [vmem:[%s4209_s0 + $0x40] ss:$8 sps:$4 sm:$0xff]   ;;  %v3281_v26 = vld [vmem:[%s4209_s0 + $0x54] ss:$8 sps:$4 sm:$0xff]  }
   0xa   :  { %v3283_v27 = vld [vmem:[%s4209_s0 + $0x50] ss:$8 sps:$4 sm:$0xff]   ;;  %v3284_v28 = vld [vmem:[%s4209_s0 + $0x64] ss:$8 sps:$4 sm:$0xff]   ;;  %v3286_v29 = vld [vmem:[%s4209_s0 + $0x60] ss:$8 sps:$4 sm:$0xff]  }
   0xb   :  { %2694 = vmatpush3.bf16.msra.mxu0 %v3255_v5  ;;  %v3287_v30 = vld [vmem:[%s4209_s0 + $0x74] ss:$8 sps:$4 sm:$0xff]   ;;  %v3289_v31 = vld [vmem:[%s4209_s0 + $0x70] ss:$8 sps:$4 sm:$0xff]  }
   0xc   :  { %2695 = vmatprep.subr.bf16.mxu0 %v3256_v6 }
   0xf   :  { %2696 = vmatpush3.bf16.msra.mxu0 %v3257_v7 }
  0x10   :  { %2697 = vmatprep.subr.bf16.mxu0 %v3258_v8 }
  0x13   :  { %2698 = vmatpush3.bf16.msra.mxu0 %v3259_v9 }
  0x14   :  { %2699 = vmatprep.subr.bf16.mxu0 %v3260_v10 }
  0x17   :  { %2700 = vmatpush3.bf16.msra.mxu0 %v3261_v12 }
  0x18   :  { %2701 = vmatprep.subr.bf16.mxu0 %v3262_v13 }
  0x1b   :  { %2702 = vmatpush3.bf16.msra.mxu0 %v3263_v14 }
  0x1c   :  { %2703 = vmatprep.subr.bf16.mxu0 %v3264_v15 }
  0x1f   :  { %2704 = vmatpush3.bf16.msra.mxu0 %v3265_v16 }
  0x22   :  { %305 = vmatmul.mubr.bf16.vlgmr.msra.gmra.mxu0 %v3266_v17 }
  0x23   :  { %2303 = vmatprep.mubr.msk.bf16.mxu0 %vm243_vm1, %v3269_v18 }
  0x2a   :  { %313 = vmatmul.mubr.bf16.gmra.mxu0 %v3271_v19 }
  0x2b   :  { %2304 = vmatprep.mubr.msk.bf16.mxu0 %vm243_vm1, %v3272_v20 }
  0x32   :  { %321 = vmatmul.mubr.bf16.gmra.mxu0 %v3274_v21 }
  0x33   :  { %2305 = vmatprep.mubr.msk.bf16.mxu0 %vm243_vm1, %v3275_v22 }
  0x3a   :  { %329 = vmatmul.mubr.bf16.gmra.mxu0 %v3277_v23 }
  0x3b   :  { %2306 = vmatprep.mubr.msk.bf16.mxu0 %vm243_vm1, %v3278_v24 }
  0x42   :  { %337 = vmatmul.mubr.bf16.gmra.mxu0 %v3280_v25 }
  0x43   :  { %2307 = vmatprep.mubr.msk.bf16.mxu0 %vm243_vm1, %v3281_v26 }
  0x4a   :  { %345 = vmatmul.mubr.bf16.gmra.mxu0 %v3283_v27 }
  0x4b   :  { %2308 = vmatprep.mubr.msk.bf16.mxu0 %vm243_vm1, %v3284_v28 }
  0x52   :  { %353 = vmatmul.mubr.bf16.gmra.mxu0 %v3286_v29 }
  0x53   :  { %2309 = vmatprep.mubr.msk.bf16.mxu0 %vm243_vm1, %v3287_v30 }
  0x5a   :  { %361 = vmatmul.mubr.bf16.gmra.mxu0 %v3289_v31 }
  0x5b   :  { %12 = vsyncpa [#allocation3], 0  ;;  %v3290_v32 = vld [vmem:[%s4212_s3 + $0x78] sm:$0xff]   ;;  %v3452_v34 = vmov 0.0   ;;  %v3292_v35 = vld [vmem:[%s4212_s3 + $0x70] sm:$0xff]   ;;  %vm3453_vm2 = vmmov 0  }
  0x5c   :  { %v3291_v33 = vld [vmem:[%s4212_s3 + $0xb8] sm:$0xff]   ;;  %2906 = vmatprep.subr.bf16.mxu1 %v3452_v34  ;;  %2946 = vmatprep.subr.bf16.mxu0 %v3452_v34  ;;  %v3293_v36 = vld [vmem:[%s4212_s3 + $0xb0] sm:$0xff]   ;;  %v3294_v37 = vld [vmem:[%s4212_s3 + $0x68] sm:$0xff]   ;;  %vm2242_vm3 = vcmask 1041408  }
  0x5d   :  { %2907 = vmatpush3.bf16.msra.mxu1 %v3290_v32  ;;  %2947 = vmatpush3.bf16.msra.mxu0 %v3291_v33  ;;  %v3295_v38 = vld [vmem:[%s4212_s3 + $0xa8] sm:$0xff]   ;;  %v3296_v39 = vld [vmem:[%s4212_s3 + $0x60] sm:$0xff]   ;;  %v3298_v41 = vld [vmem:[%s4212_s3 + $0x58] sm:$0xff]  }
  0x5e   :  { %2908 = vmatprep.subr.bf16.mxu1 %v3452_v34  ;;  %2948 = vmatprep.subr.bf16.mxu0 %v3452_v34  ;;  %v3297_v40 = vld [vmem:[%s4212_s3 + $0xa0] sm:$0xff]   ;;  %v3299_v42 = vld [vmem:[%s4212_s3 + $0x98] sm:$0xff]   ;;  %v3300_v43 = vld [vmem:[%s4212_s3 + $0x50] sm:$0xff]  }
  0x5f   :  { %v3301_v44 = vld [vmem:[%s4212_s3 + $0x90] sm:$0xff]   ;;  %v3302_v45 = vld [vmem:[%s4212_s3 + $0x48] sm:$0xff]   ;;  %v3304_v47 = vld [vmem:[%s4212_s3 + $0x40] sm:$0xff]   ;;  %2922 = vmatprep.mubr.msk.bf16.mxu1 %vm3453_vm2, %v3452_v34  ;;  %2962 = vmatprep.mubr.msk.bf16.mxu0 %vm3453_vm2, %v3452_v34 }
  0x60   :  { %v3303_v46 = vld [vmem:[%s4212_s3 + $0x88] sm:$0xff]   ;;  %v3305_v48 = vld [vmem:[%s4212_s3 + $0x80] sm:$0xff]  }
  0x61   :  { %2909 = vmatpush3.bf16.msra.mxu1 %v3292_v35  ;;  %2949 = vmatpush3.bf16.msra.mxu0 %v3293_v36  ;;  %v2310_v32 = vld [vmem:[%s4211_s2] ss:$0 sm:$0xff] }
  0x62   :  { %2910 = vmatprep.subr.bf16.mxu1 %v3452_v34  ;;  %2950 = vmatprep.subr.bf16.mxu0 %v3452_v34 }
  0x65   :  { %2911 = vmatpush3.bf16.msra.mxu1 %v3294_v37  ;;  %2951 = vmatpush3.bf16.msra.mxu0 %v3295_v38 }
  0x66   :  { %2912 = vmatprep.subr.bf16.mxu1 %v3452_v34  ;;  %2952 = vmatprep.subr.bf16.mxu0 %v3452_v34 }
  0x69   :  { %2913 = vmatpush3.bf16.msra.mxu1 %v3296_v39  ;;  %2953 = vmatpush3.bf16.msra.mxu0 %v3297_v40 }
  0x6a   :  { %2914 = vmatprep.subr.bf16.mxu1 %v3452_v34  ;;  %2954 = vmatprep.subr.bf16.mxu0 %v3452_v34 }
  0x6d   :  { %2915 = vmatpush3.bf16.msra.mxu1 %v3298_v41  ;;  %2955 = vmatpush3.bf16.msra.mxu0 %v3299_v42 }
  0x6e   :  { %2916 = vmatprep.subr.bf16.mxu1 %v3452_v34  ;;  %2956 = vmatprep.subr.bf16.mxu0 %v3452_v34 }
  0x71   :  { %2917 = vmatpush3.bf16.msra.mxu1 %v3300_v43  ;;  %2957 = vmatpush3.bf16.msra.mxu0 %v3301_v44 }
  0x72   :  { %2918 = vmatprep.subr.bf16.mxu1 %v3452_v34  ;;  %2958 = vmatprep.subr.bf16.mxu0 %v3452_v34 }
  0x75   :  { %2919 = vmatpush3.bf16.msra.mxu1 %v3302_v45  ;;  %2959 = vmatpush3.bf16.msra.mxu0 %v3303_v46 }
  0x76   :  { %2920 = vmatprep.subr.bf16.mxu1 %v3452_v34  ;;  %2960 = vmatprep.subr.bf16.mxu0 %v3452_v34 }
  0x79   :  { %2921 = vmatpush3.bf16.msra.mxu1 %v3304_v47  ;;  %2961 = vmatpush3.bf16.msra.mxu0 %v3305_v48 }
  0x7a   :  { %2926 = vmatprep.subr.bf16.mxu1 %v3452_v34  ;;  %2986 = vmatprep.subr.bf16.mxu0 %v3452_v34 }
  0xe2   :  { %v2705_v49 = vpop.f32.mrf.mxu0 }
  0xe4   :  { %v2706_v50 = vpop.f32.mrf.mxu0 }
  0xe5   :  { %v2707_v20 = vadd.f32 %v2706_v50, %v2705_v49 }
  0xe6   :  { %v2708_v51 = vpop.f32.mrf.mxu0 }
  0xe8   :  { %v2709_v52 = vpop.f32.mrf.mxu0 }
  0xe9   :  { %v2710_v28 = vadd.f32 %v2709_v52, %v2708_v51  ;;  %v3306_v52 = vld [vmem:[%s4212_s3 + $0x38] sm:$0xff]  }
  0xea   :  { %v2711_v53 = vpop.f32.mrf.mxu0 }
  0xec   :  { %v2712_v54 = vpop.f32.mrf.mxu0 }
  0xed   :  { %v2713_v55 = vadd.f32 %v2712_v54, %v2711_v53  ;;  %v3307_v53 = vld [vmem:[%s4212_s3 + $0x138] sm:$0xff]  }
  0xee   :  { %v2714_v56 = vpop.f32.mrf.mxu0 }
  0xf0   :  { %v2715_v57 = vpop.f32.mrf.mxu0 }
  0xf1   :  { %v2716_v58 = vadd.f32 %v2715_v57, %v2714_v56 }
  0xf2   :  { %v2717_v59 = vpop.f32.mrf.mxu0 }
  0xf4   :  { %v2718_v60 = vpop.f32.mrf.mxu0 }
  0xf5   :  { %v2719_v18 = vadd.f32 %v2718_v60, %v2717_v59  ;;  %v3309_v59 = vld [vmem:[%s4212_s3 + $0x130] sm:$0xff]  }
  0xf6   :  { %v2720_v61 = vpop.f32.mrf.mxu0 }
  0xf7   :  { %v369_v24 = vmax.f32 %v2707_v20, %v2719_v18  ;;  %v3328_v18 = vld [vmem:[%s4212_s3 + $0xe0] sm:$0xff]   ;;  %v3330_v20 = vld [vmem:[%s4212_s3 + $0xd8] sm:$0xff]  }
  0xf8   :  { %v2721_v62 = vpop.f32.mrf.mxu0 }
  0xf9   :  { %v2722_v25 = vadd.f32 %v2721_v62, %v2720_v61 }
  0xfa   :  { %v2723_v63 = vpop.f32.mrf.mxu0 }
  0xfb   :  { %v370_v35 = vmax.f32 %v2710_v28, %v2722_v25  ;;  %v3335_v25 = vld [vmem:[%s4212_s3 + $0x188] sm:$0xff]   ;;  %v3338_v28 = vld [vmem:[%s4212_s3 + $0x178] sm:$0xff]  }
  0xfc   :  { %v2724_v0 = vpop.f32.mrf.mxu0 }
  0xfd   :  { %v2725_v1 = vadd.f32 %v2724_v0, %v2723_v63  ;;  %v3310_v63 = vld [vmem:[%s4212_s3 + $0x28] sm:$0xff]  }
  0xfe   :  { %v2726_v2 = vpop.f32.mrf.mxu0  ;;  %v3311_v0 = vld [vmem:[%s4212_s3 + $0x128] sm:$0xff]  }
  0xff   :  { %v371_v3 = vmax.f32 %v2713_v55, %v2725_v1  ;;  %v3312_v1 = vld [vmem:[%s4212_s3 + $0x20] sm:$0xff]  }
 0x100   :  { %v2727_v4 = vpop.f32.mrf.mxu0 }
 0x101   :  { %v2728_v5 = vadd.f32 %v2727_v4, %v2726_v2  ;;  %v3313_v2 = vld [vmem:[%s4212_s3 + $0x120] sm:$0xff]   ;;  %v3315_v4 = vld [vmem:[%s4212_s3 + $0x118] sm:$0xff]  }
 0x102   :  { %v2729_v6 = vpop.f32.mrf.mxu0 }
 0x103   :  { %v372_v7 = vmax.f32 %v2716_v58, %v2728_v5  ;;  %v3308_v58 = vld [vmem:[%s4212_s3 + $0x30] sm:$0xff]  }
 0x104   :  { %v2730_v8 = vpop.f32.mrf.mxu0  ;;  %v3316_v5 = vld [vmem:[%s4212_s3 + $0x10] sm:$0xff]  }
 0x105   :  { %v2731_v21 = vadd.f32 %v2730_v8, %v2729_v6  ;;  %v3317_v6 = vld [vmem:[%s4212_s3 + $0x110] sm:$0xff]   ;;  %v3319_v8 = vld [vmem:[%s4212_s3 + $0x108] sm:$0xff]  }
 0x106   :  { %v2732_v9 = vpop.f32.mrf.mxu0 }
 0x108   :  { %v2733_v10 = vpop.f32.mrf.mxu0 }
 0x109   :  { %v2734_v29 = vadd.f32 %v2733_v10, %v2732_v9  ;;  %v3320_v9 = vld [vmem:[%s4212_s3] sm:$0xff]  }
 0x10a   :  { %v2735_v11 = vpop.f32.mrf.mxu0  ;;  %v3321_v10 = vld [vmem:[%s4212_s3 + $0x100] sm:$0xff]  }
 0x10c   :  { %v2736_v12 = vpop.f32.mrf.mxu0 }
 0x10d   :  { %v2737_v13 = vadd.f32 %v2736_v12, %v2735_v11  ;;  %v3322_v11 = vld [vmem:[%s4212_s3 + $0xf8] sm:$0xff]  }
 0x10e   :  { %v2738_v14 = vpop.f32.mrf.mxu0  ;;  %v3323_v12 = vld [vmem:[%s4212_s3 + $0x1b8] sm:$0xff]  }
 0x110   :  { %v2739_v15 = vpop.f32.mrf.mxu0 }
 0x111   :  { %v2740_v16 = vadd.f32 %v2739_v15, %v2738_v14  ;;  %v3324_v14 = vld [vmem:[%s4212_s3 + $0xf0] sm:$0xff]  }
 0x112   :  { %v2741_v17 = vpop.f32.mrf.mxu0  ;;  %v3325_v15 = vld [vmem:[%s4212_s3 + $0x1b0] sm:$0xff]  }
 0x114   :  { %v2742_v19 = vpop.f32.mrf.mxu0 }
 0x115   :  { %v2743_v22 = vadd.f32 %v2742_v19, %v2741_v17  ;;  %v3327_v17 = vld [vmem:[%s4212_s3 + $0x1a8] sm:$0xff]   ;;  %v3329_v19 = vld [vmem:[%s4212_s3 + $0x1a0] sm:$0xff]  }
 0x116   :  { %v2744_v23 = vpop.f32.mrf.mxu0 }
 0x117   :  { %v373_v26 = vmax.f32 %v2731_v21, %v2743_v22  ;;  %v3331_v21 = vld [vmem:[%s4212_s3 + $0x198] sm:$0xff]   ;;  %v3332_v22 = vld [vmem:[%s4212_s3 + $0xd0] sm:$0xff]  }
 0x118   :  { %v2745_v27 = vpop.f32.mrf.mxu0 }
 0x119   :  { %v377_v30 = vmax.f32 %v369_v24, %v373_v26  ;;  %v2746_v31 = vadd.f32 %v2745_v27, %v2744_v23  ;;  %v3333_v23 = vld [vmem:[%s4212_s3 + $0x190] sm:$0xff]   ;;  %v3334_v24 = vld [vmem:[%s4212_s3 + $0xc8] sm:$0xff]   ;;  %v3336_v26 = vld [vmem:[%s4212_s3 + $0xc0] sm:$0xff]  }
 0x11a   :  { %v2747_v33 = vpop.f32.mrf.mxu0  ;;  %v3337_v27 = vld [vmem:[%s4212_s3 + $0x180] sm:$0xff]  }
 0x11b   :  { %v374_v36 = vmax.f32 %v2734_v29, %v2746_v31  ;;  %v388_v38 = vadd.f32 %v2310_v32, %v377_v30  ;;  %v3339_v29 = vld [vmem:[%s4212_s3 + $0x238] sm:$0xff]  }
 0x11c   :  { %v2748_v37 = vpop.f32.mrf.mxu0 }
 0x11d   :  { %v378_v39 = vmax.f32 %v370_v35, %v374_v36  ;;  %v2749_v40 = vadd.f32 %v2748_v37, %v2747_v33  ;;  %v392_v45 = vmax.f32 %v388_v38, 0.0  ;;  %v3341_v33 = vld [vmem:[%s4212_s3 + $0x230] sm:$0xff]   ;;  %v3342_v35 = vld [vmem:[%s4212_s3 + $0x168] sm:$0xff]   ;;  %v3344_v37 = vld [vmem:[%s4212_s3 + $0x160] sm:$0xff]  }
 0x11e   :  { %v2750_v41 = vpop.f32.mrf.mxu0  ;;  %v3343_v36 = vld [vmem:[%s4212_s3 + $0x228] sm:$0xff]   ;;  %v3345_v38 = vld [vmem:[%s4212_s3 + $0x220] sm:$0xff]  }
 0x11f   :  { %v389_v42 = vadd.f32 %v2310_v32, %v378_v39  ;;  %v375_v43 = vmax.f32 %v2737_v13, %v2749_v40  ;;  %v3346_v39 = vld [vmem:[%s4212_s3 + $0x158] sm:$0xff]  }
 0x120   :  { %v2751_v44 = vpop.f32.mrf.mxu0  ;;  %v3347_v40 = vld [vmem:[%s4212_s3 + $0x218] sm:$0xff]  }
 0x121   :  { %v393_v46 = vmax.f32 %v389_v42, 0.0  ;;  %v379_v47 = vmax.f32 %v371_v3, %v375_v43  ;;  %v2752_v48 = vadd.f32 %v2751_v44, %v2750_v41  ;;  %v3314_v3 = vld [vmem:[%s4212_s3 + $0x18] sm:$0xff]   ;;  %v3348_v41 = vld [vmem:[%s4212_s3 + $0x150] sm:$0xff]   ;;  %v3350_v43 = vld [vmem:[%s4212_s3 + $0x148] sm:$0xff]  }
 0x122   :  { %v3349_v42 = vld [vmem:[%s4212_s3 + $0x210] sm:$0xff]   ;;  %v3351_v44 = vld [vmem:[%s4212_s3 + $0x208] sm:$0xff]  }
 0x123   :  { %v3672_v49 = vpack.c.bf16 %v393_v46, %v392_v45  ;;  %v390_v50 = vadd.f32 %v2310_v32, %v379_v47  ;;  %v376_v51 = vmax.f32 %v2740_v16, %v2752_v48  ;;  %v3326_v16 = vld [vmem:[%s4212_s3 + $0xe8] sm:$0xff]   ;;  %v3352_v45 = vld [vmem:[%s4212_s3 + $0x140] sm:$0xff]   ;;  %v3354_v47 = vld [vmem:[%s4212_s3 + $0x1f8] sm:$0xff]  }
 0x124   :  { %v3353_v46 = vld [vmem:[%s4212_s3 + $0x200] sm:$0xff]   ;;  %v3355_v48 = vld [vmem:[%s4212_s3 + $0x2b8] sm:$0xff]  }
 0x125   :  { %v380_v54 = vmax.f32 %v372_v7, %v376_v51  ;;  %v432_v55 = vrot.slane %v3672_v49, 1  ;;  %v627_v56 = vrot.slane %v3672_v49, 2  ;;  %v394_v60 = vmax.f32 %v390_v50, 0.0  ;;  %v3318_v7 = vld [vmem:[%s4212_s3 + $0x8] sm:$0xff]   ;;  %v3356_v51 = vld [vmem:[%s4212_s3 + $0x1f0] sm:$0xff]  }
 0x126   :  { %v843_v13 = vrot.slane %v3672_v49, 4  ;;  %v735_v30 = vrot.slane %v3672_v49, 3  ;;  %v1059_v31 = vrot.slane %v3672_v49, 6  ;;  %v951_v50 = vrot.slane %v3672_v49, 5 }
 0x127   :  { %v391_v57 = vadd.f32 %v2310_v32, %v380_v54  ;;  %2923 = vmatmul.mubr.bf16.vlgmr.msra.gmra.mxu1 %v432_v55  ;;  %2963 = vmatmul.mubr.bf16.vlgmr.msra.gmra.mxu0 %v627_v56  ;;  %v3340_v32 = vld [vmem:[%s4212_s3 + $0x170] sm:$0xff]   ;;  %v3359_v54 = vld [vmem:[%s4212_s3 + $0x2a8] sm:$0xff]   ;;  %v3360_v55 = vld [vmem:[%s4212_s3 + $0x1e0] sm:$0xff]  }
 0x128   :  { %2927 = vmatpush3.bf16.msra.mxu1 %v3306_v52  ;;  %2987 = vmatpush3.bf16.msra.mxu0 %v3307_v53  ;;  %v3357_v52 = vld [vmem:[%s4212_s3 + $0x2b0] sm:$0xff]   ;;  %v3358_v53 = vld [vmem:[%s4212_s3 + $0x1e8] sm:$0xff]   ;;  %v3361_v56 = vld [vmem:[%s4212_s3 + $0x2a0] sm:$0xff]  }
 0x129   :  { %v395_v61 = vmax.f32 %v391_v57, 0.0  ;;  %2928 = vmatprep.subr.bf16.mxu1 %v3452_v34  ;;  %2988 = vmatprep.subr.bf16.mxu0 %v3452_v34  ;;  %v3362_v57 = vld [vmem:[%s4212_s3 + $0x1d8] sm:$0xff]  }
 0x12a   :  { %2942 = vmatprep.mubr.msk.bf16.mxu1 %vm3453_vm2, %v3452_v34  ;;  %3002 = vmatprep.mubr.msk.bf16.mxu0 %vm3453_vm2, %v3452_v34 }
 0x12b   :  { %v3694_v62 = vpack.c.bf16 %v395_v61, %v394_v60  ;;  %v3365_v60 = vld [vmem:[%s4212_s3 + $0x290] sm:$0xff]   ;;  %v3366_v61 = vld [vmem:[%s4212_s3 + $0x1c8] sm:$0xff]  }
 0x12c   :  { %2929 = vmatpush3.bf16.msra.mxu1 %v3308_v58  ;;  %2989 = vmatpush3.bf16.msra.mxu0 %v3309_v59  ;;  %v3363_v58 = vld [vmem:[%s4212_s3 + $0x298] sm:$0xff]   ;;  %v3364_v59 = vld [vmem:[%s4212_s3 + $0x1d0] sm:$0xff]  }
 0x12d   :  { %2930 = vmatprep.subr.bf16.mxu1 %v3452_v34  ;;  %2990 = vmatprep.subr.bf16.mxu0 %v3452_v34 }
 0x130   :  { %2931 = vmatpush3.bf16.msra.mxu1 %v3310_v63  ;;  %2991 = vmatpush3.bf16.msra.mxu0 %v3311_v0  ;;  %v3367_v63 = vld [vmem:[%s4212_s3 + $0x288] sm:$0xff]   ;;  %v3368_v0 = vld [vmem:[%s4212_s3 + $0x1c0] sm:$0xff]  }
 0x131   :  { %2932 = vmatprep.subr.bf16.mxu1 %v3452_v34  ;;  %2992 = vmatprep.subr.bf16.mxu0 %v3452_v34 }
 0x134   :  { %2933 = vmatpush3.bf16.msra.mxu1 %v3312_v1  ;;  %2993 = vmatpush3.bf16.msra.mxu0 %v3313_v2  ;;  %v3369_v1 = vld [vmem:[%s4212_s3 + $0x280] sm:$0xff]   ;;  %v3370_v2 = vld [vmem:[%s4212_s3 + $0x278] sm:$0xff]  }
 0x135   :  { %2934 = vmatprep.subr.bf16.mxu1 %v3452_v34  ;;  %2994 = vmatprep.subr.bf16.mxu0 %v3452_v34 }
 0x138   :  { %2935 = vmatpush3.bf16.msra.mxu1 %v3314_v3  ;;  %2995 = vmatpush3.bf16.msra.mxu0 %v3315_v4  ;;  %v3371_v3 = vld [vmem:[%s4212_s3 + $0x338] sm:$0xff]   ;;  %v1167_v4 = vrot.slane %v3672_v49, 7 }
 0x139   :  { %2936 = vmatprep.subr.bf16.mxu1 %v3452_v34  ;;  %2996 = vmatprep.subr.bf16.mxu0 %v3452_v34 }
 0x13c   :  { %2937 = vmatpush3.bf16.msra.mxu1 %v3316_v5  ;;  %2997 = vmatpush3.bf16.msra.mxu0 %v3317_v6  ;;  %v1490_v5 = vrot.slane %v3694_v62, 2  ;;  %v3372_v6 = vld [vmem:[%s4212_s3 + $0x270] sm:$0xff]  }
 0x13d   :  { %2938 = vmatprep.subr.bf16.mxu1 %v3452_v34  ;;  %2998 = vmatprep.subr.bf16.mxu0 %v3452_v34 }
 0x140   :  { %2939 = vmatpush3.bf16.msra.mxu1 %v3318_v7  ;;  %2999 = vmatpush3.bf16.msra.mxu0 %v3319_v8  ;;  %v3373_v7 = vld [vmem:[%s4212_s3 + $0x330] sm:$0xff]   ;;  %v3375_v8 = vld [vmem:[%s4212_s3 + $0x328] sm:$0xff]  }
 0x141   :  { %2940 = vmatprep.subr.bf16.mxu1 %v3452_v34  ;;  %3000 = vmatprep.subr.bf16.mxu0 %v3452_v34 }
 0x144   :  { %2941 = vmatpush3.bf16.msra.mxu1 %v3320_v9  ;;  %3001 = vmatpush3.bf16.msra.mxu0 %v3321_v10  ;;  %v3376_v9 = vld [vmem:[%s4212_s3 + $0x260] sm:$0xff]  }
 0x145   :  { %2966 = vmatprep.subr.bf16.mxu1 %v3452_v34  ;;  %3026 = vmatprep.subr.bf16.mxu0 %v3452_v34  ;;  %v3377_v10 = vld [vmem:[%s4212_s3 + $0x320] sm:$0xff]  }
 0x147   :  { %2943 = vmatmul.mubr.bf16.vlgmr.msra.gmra.mxu1 %v3672_v49  ;;  %3003 = vmatmul.mubr.bf16.vlgmr.msra.gmra.mxu0 %v843_v13  ;;  %v3374_v49 = vld [vmem:[%s4212_s3 + $0x268] sm:$0xff]   ;;  %v3380_v13 = vld [vmem:[%s4212_s3 + $0x250] sm:$0xff]  }
 0x148   :  { %2967 = vmatpush3.bf16.msra.mxu1 %v3322_v11  ;;  %3027 = vmatpush3.bf16.msra.mxu0 %v3323_v12  ;;  %v3378_v11 = vld [vmem:[%s4212_s3 + $0x258] sm:$0xff]  }
 0x149   :  { %2968 = vmatprep.subr.bf16.mxu1 %v3452_v34  ;;  %3028 = vmatprep.subr.bf16.mxu0 %v3452_v34  ;;  %v3379_v12 = vld [vmem:[%s4212_s3 + $0x318] sm:$0xff]  }
 0x14a   :  { %2982 = vmatprep.mubr.msk.bf16.mxu1 %vm3453_vm2, %v3452_v34  ;;  %3042 = vmatprep.mubr.msk.bf16.mxu0 %vm3453_vm2, %v3452_v34 }
 0x14c   :  { %2969 = vmatpush3.bf16.msra.mxu1 %v3324_v14  ;;  %3029 = vmatpush3.bf16.msra.mxu0 %v3325_v15  ;;  %v3381_v14 = vld [vmem:[%s4212_s3 + $0x310] sm:$0xff]   ;;  %v3382_v15 = vld [vmem:[%s4212_s3 + $0x248] sm:$0xff]  }
 0x14d   :  { %2970 = vmatprep.subr.bf16.mxu1 %v3452_v34  ;;  %3030 = vmatprep.subr.bf16.mxu0 %v3452_v34 }
 0x150   :  { %2971 = vmatpush3.bf16.msra.mxu1 %v3326_v16  ;;  %3031 = vmatpush3.bf16.msra.mxu0 %v3327_v17  ;;  %v3383_v16 = vld [vmem:[%s4212_s3 + $0x308] sm:$0xff]   ;;  %v3384_v17 = vld [vmem:[%s4212_s3 + $0x240] sm:$0xff]  }
 0x151   :  { %2972 = vmatprep.subr.bf16.mxu1 %v3452_v34  ;;  %3032 = vmatprep.subr.bf16.mxu0 %v3452_v34 }
 0x154   :  { %2973 = vmatpush3.bf16.msra.mxu1 %v3328_v18  ;;  %3033 = vmatpush3.bf16.msra.mxu0 %v3329_v19  ;;  %v3385_v18 = vld [vmem:[%s4212_s3 + $0x300] sm:$0xff]   ;;  %v3386_v19 = vld [vmem:[%s4212_s3 + $0x2f8] sm:$0xff]  }
 0x155   :  { %2974 = vmatprep.subr.bf16.mxu1 %v3452_v34  ;;  %3034 = vmatprep.subr.bf16.mxu0 %v3452_v34 }
 0x158   :  { %2975 = vmatpush3.bf16.msra.mxu1 %v3330_v20  ;;  %3035 = vmatpush3.bf16.msra.mxu0 %v3331_v21  ;;  %v3387_v20 = vld [vmem:[%s4212_s3 + $0x3b8] sm:$0xff]   ;;  %v1382_v21 = vrot.slane %v3694_v62, 1 }
 0x159   :  { %2976 = vmatprep.subr.bf16.mxu1 %v3452_v34  ;;  %3036 = vmatprep.subr.bf16.mxu0 %v3452_v34 }
 0x15c   :  { %2977 = vmatpush3.bf16.msra.mxu1 %v3332_v22  ;;  %3037 = vmatpush3.bf16.msra.mxu0 %v3333_v23  ;;  %v1706_v22 = vrot.slane %v3694_v62, 4  ;;  %v3388_v23 = vld [vmem:[%s4212_s3 + $0x2f0] sm:$0xff]  }
 0x15d   :  { %2978 = vmatprep.subr.bf16.mxu1 %v3452_v34  ;;  %3038 = vmatprep.subr.bf16.mxu0 %v3452_v34 }
 0x160   :  { %2979 = vmatpush3.bf16.msra.mxu1 %v3334_v24  ;;  %3039 = vmatpush3.bf16.msra.mxu0 %v3335_v25  ;;  %v3389_v24 = vld [vmem:[%s4212_s3 + $0x3b0] sm:$0xff]   ;;  %v3390_v25 = vld [vmem:[%s4212_s3 + $0x2e8] sm:$0xff]  }
 0x161   :  { %2980 = vmatprep.subr.bf16.mxu1 %v3452_v34  ;;  %3040 = vmatprep.subr.bf16.mxu0 %v3452_v34 }
 0x164   :  { %2981 = vmatpush3.bf16.msra.mxu1 %v3336_v26  ;;  %3041 = vmatpush3.bf16.msra.mxu0 %v3337_v27  ;;  %v3391_v26 = vld [vmem:[%s4212_s3 + $0x3a8] sm:$0xff]   ;;  %v3392_v27 = vld [vmem:[%s4212_s3 + $0x2e0] sm:$0xff]  }
 0x165   :  { %3006 = vmatprep.subr.bf16.mxu1 %v3452_v34  ;;  %3066 = vmatprep.subr.bf16.mxu0 %v3452_v34 }
 0x167   :  { %2983 = vmatmul.mubr.bf16.vlgmr.msra.gmra.mxu1 %v735_v30  ;;  %3043 = vmatmul.mubr.bf16.vlgmr.msra.gmra.mxu0 %v1059_v31  ;;  %v3395_v30 = vld [vmem:[%s4212_s3 + $0x398] sm:$0xff]   ;;  %v3396_v31 = vld [vmem:[%s4212_s3 + $0x2d0] sm:$0xff]  }
 0x168   :  { %3007 = vmatpush3.bf16.msra.mxu1 %v3338_v28  ;;  %3067 = vmatpush3.bf16.msra.mxu0 %v3339_v29  ;;  %v3393_v28 = vld [vmem:[%s4212_s3 + $0x3a0] sm:$0xff]   ;;  %v3394_v29 = vld [vmem:[%s4212_s3 + $0x2d8] sm:$0xff]  }
 0x169   :  { %3008 = vmatprep.subr.bf16.mxu1 %v3452_v34  ;;  %3068 = vmatprep.subr.bf16.mxu0 %v3452_v34 }
 0x16a   :  { %3022 = vmatprep.mubr.msk.bf16.mxu1 %vm3453_vm2, %v3452_v34  ;;  %3082 = vmatprep.mubr.msk.bf16.mxu0 %vm3453_vm2, %v3452_v34 }
 0x16c   :  { %3009 = vmatpush3.bf16.msra.mxu1 %v3340_v32  ;;  %3069 = vmatpush3.bf16.msra.mxu0 %v3341_v33  ;;  %v3397_v32 = vld [vmem:[%s4212_s3 + $0x390] sm:$0xff]   ;;  %v3398_v33 = vld [vmem:[%s4212_s3 + $0x2c8] sm:$0xff]  }
 0x16d   :  { %3010 = vmatprep.subr.bf16.mxu1 %v3452_v34  ;;  %3070 = vmatprep.subr.bf16.mxu0 %v3452_v34 }
 0x170   :  { %3011 = vmatpush3.bf16.msra.mxu1 %v3342_v35  ;;  %3071 = vmatpush3.bf16.msra.mxu0 %v3343_v36  ;;  %v3399_v35 = vld [vmem:[%s4212_s3 + $0x388] sm:$0xff]   ;;  %v3400_v36 = vld [vmem:[%s4212_s3 + $0x2c0] sm:$0xff]  }
 0x171   :  { %3012 = vmatprep.subr.bf16.mxu1 %v3452_v34  ;;  %3072 = vmatprep.subr.bf16.mxu0 %v3452_v34 }
 0x174   :  { %3013 = vmatpush3.bf16.msra.mxu1 %v3344_v37  ;;  %3073 = vmatpush3.bf16.msra.mxu0 %v3345_v38  ;;  %v3401_v37 = vld [vmem:[%s4212_s3 + $0x380] sm:$0xff]   ;;  %v3402_v38 = vld [vmem:[%s4212_s3 + $0x378] sm:$0xff]  }
 0x175   :  { %3014 = vmatprep.subr.bf16.mxu1 %v3452_v34  ;;  %3074 = vmatprep.subr.bf16.mxu0 %v3452_v34 }
 0x178   :  { %3015 = vmatpush3.bf16.msra.mxu1 %v3346_v39  ;;  %3075 = vmatpush3.bf16.msra.mxu0 %v3347_v40  ;;  %v1598_v39 = vrot.slane %v3694_v62, 3  ;;  %v1922_v40 = vrot.slane %v3694_v62, 6 }
 0x179   :  { %3016 = vmatprep.subr.bf16.mxu1 %v3452_v34  ;;  %3076 = vmatprep.subr.bf16.mxu0 %v3452_v34 }
 0x17c   :  { %3017 = vmatpush3.bf16.msra.mxu1 %v3348_v41  ;;  %3077 = vmatpush3.bf16.msra.mxu0 %v3349_v42 }
 0x17d   :  { %3018 = vmatprep.subr.bf16.mxu1 %v3452_v34  ;;  %3078 = vmatprep.subr.bf16.mxu0 %v3452_v34 }
 0x180   :  { %3019 = vmatpush3.bf16.msra.mxu1 %v3350_v43  ;;  %3079 = vmatpush3.bf16.msra.mxu0 %v3351_v44  ;;  %v3403_v43 = vld [vmem:[%s4212_s3 + $0x370] sm:$0xff]  }
 0x181   :  { %3020 = vmatprep.subr.bf16.mxu1 %v3452_v34  ;;  %3080 = vmatprep.subr.bf16.mxu0 %v3452_v34 }
 0x184   :  { %3021 = vmatpush3.bf16.msra.mxu1 %v3352_v45  ;;  %3081 = vmatpush3.bf16.msra.mxu0 %v3353_v46 }
 0x185   :  { %3046 = vmatprep.subr.bf16.mxu1 %v3452_v34  ;;  %3106 = vmatprep.subr.bf16.mxu0 %v3452_v34 }
 0x187   :  { %3023 = vmatmul.mubr.bf16.vlgmr.msra.gmra.mxu1 %v951_v50  ;;  %3083 = vmatmul.mubr.bf16.vlgmr.msra.gmra.mxu0 %v3694_v62 }
 0x188   :  { %3047 = vmatpush3.bf16.msra.mxu1 %v3354_v47  ;;  %3107 = vmatpush3.bf16.msra.mxu0 %v3355_v48  ;;  %v3404_v48 = vld [vmem:[%s4212_s3 + $0x368] sm:$0xff]  }
 0x189   :  { %3048 = vmatprep.subr.bf16.mxu1 %v3452_v34  ;;  %3108 = vmatprep.subr.bf16.mxu0 %v3452_v34 }
 0x18a   :  { %3062 = vmatprep.mubr.msk.bf16.mxu1 %vm3453_vm2, %v3452_v34  ;;  %3122 = vmatprep.mubr.msk.bf16.mxu0 %vm3453_vm2, %v3452_v34 }
 0x18c   :  { %3049 = vmatpush3.bf16.msra.mxu1 %v3356_v51  ;;  %3109 = vmatpush3.bf16.msra.mxu0 %v3357_v52  ;;  %v3405_v52 = vld [vmem:[%s4212_s3 + $0x360] sm:$0xff]  }
 0x18d   :  { %3050 = vmatprep.subr.bf16.mxu1 %v3452_v34  ;;  %3110 = vmatprep.subr.bf16.mxu0 %v3452_v34 }
 0x190   :  { %3051 = vmatpush3.bf16.msra.mxu1 %v3358_v53  ;;  %3111 = vmatpush3.bf16.msra.mxu0 %v3359_v54  ;;  %v3406_v53 = vld [vmem:[%s4212_s3 + $0x358] sm:$0xff]   ;;  %v3407_v54 = vld [vmem:[%s4212_s3 + $0x350] sm:$0xff]  }
 0x191   :  { %3052 = vmatprep.subr.bf16.mxu1 %v3452_v34  ;;  %3112 = vmatprep.subr.bf16.mxu0 %v3452_v34 }
 0x194   :  { %3053 = vmatpush3.bf16.msra.mxu1 %v3360_v55  ;;  %3113 = vmatpush3.bf16.msra.mxu0 %v3361_v56  ;;  %v3408_v55 = vld [vmem:[%s4212_s3 + $0x348] sm:$0xff]   ;;  %v3409_v56 = vld [vmem:[%s4212_s3 + $0x340] sm:$0xff]  }
 0x195   :  { %3054 = vmatprep.subr.bf16.mxu1 %v3452_v34  ;;  %3114 = vmatprep.subr.bf16.mxu0 %v3452_v34 }
 0x198   :  { %3055 = vmatpush3.bf16.msra.mxu1 %v3362_v57  ;;  %3115 = vmatpush3.bf16.msra.mxu0 %v3363_v58  ;;  %v3410_v57 = vld [vmem:[%s4212_s3 + $0x3f8] sm:$0xff]   ;;  %v1814_v58 = vrot.slane %v3694_v62, 5 }
 0x199   :  { %3056 = vmatprep.subr.bf16.mxu1 %v3452_v34  ;;  %3116 = vmatprep.subr.bf16.mxu0 %v3452_v34 }
 0x19c   :  { %3057 = vmatpush3.bf16.msra.mxu1 %v3364_v59  ;;  %3117 = vmatpush3.bf16.msra.mxu0 %v3365_v60 }
 0x19d   :  { %3058 = vmatprep.subr.bf16.mxu1 %v3452_v34  ;;  %3118 = vmatprep.subr.bf16.mxu0 %v3452_v34 }
 0x1a0   :  { %3059 = vmatpush3.bf16.msra.mxu1 %v3366_v61  ;;  %3119 = vmatpush3.bf16.msra.mxu0 %v3367_v63  ;;  %v3411_v63 = vld [vmem:[%s4212_s3 + $0x3f0] sm:$0xff]  }
 0x1a1   :  { %3060 = vmatprep.subr.bf16.mxu1 %v3452_v34  ;;  %3120 = vmatprep.subr.bf16.mxu0 %v3452_v34 }
 0x1a4   :  { %3061 = vmatpush3.bf16.msra.mxu1 %v3368_v0  ;;  %3121 = vmatpush3.bf16.msra.mxu0 %v3369_v1 }
 0x1a5   :  { %3086 = vmatprep.subr.bf16.mxu1 %v3452_v34  ;;  %3146 = vmatprep.subr.bf16.mxu0 %v3452_v34 }
 0x1a7   :  { %3063 = vmatmul.mubr.bf16.vlgmr.msra.gmra.mxu1 %v1167_v4  ;;  %3123 = vmatmul.mubr.bf16.vlgmr.msra.gmra.mxu0 %v1490_v5  ;;  %v3412_v5 = vld [vmem:[%s4212_s3 + $0x3e8] sm:$0xff]  }
 0x1a8   :  { %3087 = vmatpush3.bf16.msra.mxu1 %v3370_v2  ;;  %3147 = vmatpush3.bf16.msra.mxu0 %v3371_v3 }
 0x1a9   :  { %3088 = vmatprep.subr.bf16.mxu1 %v3452_v34  ;;  %3148 = vmatprep.subr.bf16.mxu0 %v3452_v34 }
 0x1aa   :  { %3102 = vmatprep.mubr.msk.bf16.mxu1 %vm3453_vm2, %v3452_v34  ;;  %3162 = vmatprep.mubr.msk.bf16.mxu0 %vm3453_vm2, %v3452_v34 }
 0x1ac   :  { %3089 = vmatpush3.bf16.msra.mxu1 %v3372_v6  ;;  %3149 = vmatpush3.bf16.msra.mxu0 %v3373_v7 }
 0x1ad   :  { %3090 = vmatprep.subr.bf16.mxu1 %v3452_v34  ;;  %3150 = vmatprep.subr.bf16.mxu0 %v3452_v34 }
 0x1b0   :  { %3091 = vmatpush3.bf16.msra.mxu1 %v3374_v49  ;;  %3151 = vmatpush3.bf16.msra.mxu0 %v3375_v8  ;;  %v3413_v49 = vld [vmem:[%s4212_s3 + $0x3e0] sm:$0xff]   ;;  %v3414_v8 = vld [vmem:[%s4212_s3 + $0x3d8] sm:$0xff]  }
 0x1b1   :  { %3092 = vmatprep.subr.bf16.mxu1 %v3452_v34  ;;  %3152 = vmatprep.subr.bf16.mxu0 %v3452_v34 }
 0x1b4   :  { %3093 = vmatpush3.bf16.msra.mxu1 %v3376_v9  ;;  %3153 = vmatpush3.bf16.msra.mxu0 %v3377_v10  ;;  %v3415_v9 = vld [vmem:[%s4212_s3 + $0x3d0] sm:$0xff]   ;;  %v3416_v10 = vld [vmem:[%s4212_s3 + $0x3c8] sm:$0xff]  }
 0x1b5   :  { %3094 = vmatprep.subr.bf16.mxu1 %v3452_v34  ;;  %3154 = vmatprep.subr.bf16.mxu0 %v3452_v34 }
 0x1b8   :  { %3095 = vmatpush3.bf16.msra.mxu1 %v3378_v11  ;;  %3155 = vmatpush3.bf16.msra.mxu0 %v3379_v12  ;;  %v3417_v11 = vld [vmem:[%s4212_s3 + $0x3c0] sm:$0xff]   ;;  %v2030_v12 = vrot.slane %v3694_v62, 7 }
 0x1b9   :  { %3096 = vmatprep.subr.bf16.mxu1 %v3452_v34  ;;  %3156 = vmatprep.subr.bf16.mxu0 %v3452_v34 }
 0x1bc   :  { %3097 = vmatpush3.bf16.msra.mxu1 %v3380_v13  ;;  %3157 = vmatpush3.bf16.msra.mxu0 %v3381_v14 }
 0x1bd   :  { %3098 = vmatprep.subr.bf16.mxu1 %v3452_v34  ;;  %3158 = vmatprep.subr.bf16.mxu0 %v3452_v34 }
 0x1c0   :  { %3099 = vmatpush3.bf16.msra.mxu1 %v3382_v15  ;;  %3159 = vmatpush3.bf16.msra.mxu0 %v3383_v16 }
 0x1c1   :  { %3100 = vmatprep.subr.bf16.mxu1 %v3452_v34  ;;  %3160 = vmatprep.subr.bf16.mxu0 %v3452_v34 }
 0x1c4   :  { %3101 = vmatpush3.bf16.msra.mxu1 %v3384_v17  ;;  %3161 = vmatpush3.bf16.msra.mxu0 %v3385_v18 }
 0x1c5   :  { %3126 = vmatprep.subr.bf16.mxu1 %v3452_v34  ;;  %3186 = vmatprep.subr.bf16.mxu0 %v3452_v34 }
 0x1c7   :  { %3103 = vmatmul.mubr.bf16.vlgmr.msra.gmra.mxu1 %v1382_v21  ;;  %3163 = vmatmul.mubr.bf16.vlgmr.msra.gmra.mxu0 %v1706_v22 }
 0x1c8   :  { %3127 = vmatpush3.bf16.msra.mxu1 %v3386_v19  ;;  %3187 = vmatpush3.bf16.msra.mxu0 %v3387_v20 }
 0x1c9   :  { %3128 = vmatprep.subr.bf16.mxu1 %v3452_v34  ;;  %3188 = vmatprep.subr.bf16.mxu0 %v3452_v34 }
 0x1ca   :  { %3142 = vmatprep.mubr.msk.bf16.mxu1 %vm3453_vm2, %v3452_v34  ;;  %3202 = vmatprep.mubr.msk.bf16.mxu0 %vm3453_vm2, %v3452_v34 }
 0x1cc   :  { %3129 = vmatpush3.bf16.msra.mxu1 %v3388_v23  ;;  %3189 = vmatpush3.bf16.msra.mxu0 %v3389_v24 }
 0x1cd   :  { %3130 = vmatprep.subr.bf16.mxu1 %v3452_v34  ;;  %3190 = vmatprep.subr.bf16.mxu0 %v3452_v34 }
 0x1d0   :  { %3131 = vmatpush3.bf16.msra.mxu1 %v3390_v25  ;;  %3191 = vmatpush3.bf16.msra.mxu0 %v3391_v26 }
 0x1d1   :  { %3132 = vmatprep.subr.bf16.mxu1 %v3452_v34  ;;  %3192 = vmatprep.subr.bf16.mxu0 %v3452_v34 }
 0x1d4   :  { %3133 = vmatpush3.bf16.msra.mxu1 %v3392_v27  ;;  %3193 = vmatpush3.bf16.msra.mxu0 %v3393_v28 }
 0x1d5   :  { %3134 = vmatprep.subr.bf16.mxu1 %v3452_v34  ;;  %3194 = vmatprep.subr.bf16.mxu0 %v3452_v34 }
 0x1d8   :  { %3135 = vmatpush3.bf16.msra.mxu1 %v3394_v29  ;;  %3195 = vmatpush3.bf16.msra.mxu0 %v3395_v30 }
 0x1d9   :  { %3136 = vmatprep.subr.bf16.mxu1 %v3452_v34  ;;  %3196 = vmatprep.subr.bf16.mxu0 %v3452_v34 }
 0x1dc   :  { %3137 = vmatpush3.bf16.msra.mxu1 %v3396_v31  ;;  %3197 = vmatpush3.bf16.msra.mxu0 %v3397_v32  ;;  %v3418_v32 = vld [vmem:[%s4214_s5 + $0x38] sm:$0xff]  }
 0x1dd   :  { %3138 = vmatprep.subr.bf16.mxu1 %v3452_v34  ;;  %3198 = vmatprep.subr.bf16.mxu0 %v3452_v34 }
 0x1e0   :  { %3139 = vmatpush3.bf16.msra.mxu1 %v3398_v33  ;;  %3199 = vmatpush3.bf16.msra.mxu0 %v3399_v35  ;;  %v3419_v33 = vld [vmem:[%s4214_s5 + $0x30] sm:$0xff]   ;;  %v3420_v35 = vld [vmem:[%s4214_s5 + $0x28] sm:$0xff]  }
 0x1e1   :  { %3140 = vmatprep.subr.bf16.mxu1 %v3452_v34  ;;  %3200 = vmatprep.subr.bf16.mxu0 %v3452_v34 }
 0x1e4   :  { %3141 = vmatpush3.bf16.msra.mxu1 %v3400_v36  ;;  %3201 = vmatpush3.bf16.msra.mxu0 %v3401_v37  ;;  %v3421_v36 = vld [vmem:[%s4214_s5 + $0x20] sm:$0xff]   ;;  %v3422_v37 = vld [vmem:[%s4214_s5 + $0x18] sm:$0xff]  }
 0x1e5   :  { %3166 = vmatprep.subr.bf16.mxu1 %v3452_v34  ;;  %3226 = vmatprep.subr.bf16.mxu0 %v3452_v34 }
 0x1e7   :  { %3143 = vmatmul.mubr.bf16.vlgmr.msra.gmra.mxu1 %v1598_v39  ;;  %3203 = vmatmul.mubr.bf16.vlgmr.msra.gmra.mxu0 %v1922_v40  ;;  %v516_v41 = vpop.f32.mrf.mxu1  ;;  %v711_v42 = vpop.f32.mrf.mxu0 }
 0x1e8   :  { %3167 = vmatpush3.bf16.msra.mxu1 %v3402_v38  ;;  %3182 = vmatprep.mubr.msk.bf16.mxu1 %vm3453_vm2, %v3452_v34  ;;  %v3423_v38 = vld [vmem:[%s4214_s5 + $0x10] sm:$0xff]  }
 0x1e9   :  { %v2924_v44 = vpop.f32.mrf.mxu1  ;;  %v2964_v45 = vpop.f32.mrf.mxu0  ;;  %3168 = vmatprep.subr.bf16.mxu1 %v3452_v34  ;;  %3242 = vmatprep.mubr.msk.bf16.mxu0 %vm3453_vm2, %v3452_v34 }
 0x1ea   :  { %3227 = vmatpush3.bf16.msra.mxu0 %v3418_v32 }
 0x1eb   :  { %v519_v46 = vpop.f32.mrf.mxu1  ;;  %v714_v47 = vpop.f32.mrf.mxu0  ;;  %3228 = vmatprep.subr.bf16.mxu0 %v3452_v34 }
 0x1ec   :  { %3169 = vmatpush3.bf16.msra.mxu1 %v3403_v43 }
 0x1ed   :  { %v2925_v50 = vpop.f32.mrf.mxu1  ;;  %v2965_v51 = vpop.f32.mrf.mxu0  ;;  %3170 = vmatprep.subr.bf16.mxu1 %v3452_v34 }
 0x1ee   :  { %3229 = vmatpush3.bf16.msra.mxu0 %v3419_v33 }
 0x1ef   :  { %3230 = vmatprep.subr.bf16.mxu0 %v3452_v34 }
 0x1f0   :  { %3171 = vmatpush3.bf16.msra.mxu1 %v3404_v48  ;;  %v3425_v48 = vld [vmem:[%s4214_s5] sm:$0xff]  }
 0x1f1   :  { %3172 = vmatprep.subr.bf16.mxu1 %v3452_v34 }
 0x1f2   :  { %3231 = vmatpush3.bf16.msra.mxu0 %v3420_v35 }
 0x1f3   :  { %3232 = vmatprep.subr.bf16.mxu0 %v3452_v34 }
 0x1f4   :  { %3173 = vmatpush3.bf16.msra.mxu1 %v3405_v52 }
 0x1f5   :  { %3174 = vmatprep.subr.bf16.mxu1 %v3452_v34 }
 0x1f6   :  { %3233 = vmatpush3.bf16.msra.mxu0 %v3421_v36 }
 0x1f7   :  { %3234 = vmatprep.subr.bf16.mxu0 %v3452_v34 }
 0x1f8   :  { %3175 = vmatpush3.bf16.msra.mxu1 %v3406_v53 }
 0x1f9   :  { %3176 = vmatprep.subr.bf16.mxu1 %v3452_v34 }
 0x1fa   :  { %3235 = vmatpush3.bf16.msra.mxu0 %v3422_v37 }
 0x1fb   :  { %3236 = vmatprep.subr.bf16.mxu0 %v3452_v34 }
 0x1fc   :  { %3177 = vmatpush3.bf16.msra.mxu1 %v3407_v54 }
 0x1fd   :  { %3178 = vmatprep.subr.bf16.mxu1 %v3452_v34 }
 0x1fe   :  { %3237 = vmatpush3.bf16.msra.mxu0 %v3423_v38 }
 0x1ff   :  { %3238 = vmatprep.subr.bf16.mxu0 %v3452_v34 }
 0x200   :  { %3179 = vmatpush3.bf16.msra.mxu1 %v3408_v55 }
 0x201   :  { %3180 = vmatprep.subr.bf16.mxu1 %v3452_v34 }
 0x204   :  { %3181 = vmatpush3.bf16.msra.mxu1 %v3409_v56 }
 0x205   :  { %3206 = vmatprep.subr.bf16.mxu1 %v3452_v34 }
 0x207   :  { %v604_v59 = vpop.f32.mrf.mxu1  ;;  %v927_v60 = vpop.f32.mrf.mxu0  ;;  %3183 = vmatmul.mubr.bf16.vlgmr.msra.gmra.mxu1 %v1814_v58 }
 0x208   :  { %v605_v61 = vadd.f32 %v604_v59, %v516_v41  ;;  %3207 = vmatpush3.bf16.msra.mxu1 %v3410_v57  ;;  %3222 = vmatprep.mubr.msk.bf16.mxu1 %vm3453_vm2, %v3452_v34 }
 0x209   :  { %v2944_v0 = vpop.f32.mrf.mxu1  ;;  %v3004_v1 = vpop.f32.mrf.mxu0  ;;  %3208 = vmatprep.subr.bf16.mxu1 %v3452_v34 }
 0x20a   :  { %v717_v2 = vadd.f32 %v711_v42, %v605_v61  ;;  %v3424_v42 = vld [vmem:[%s4214_s5 + $0x8] sm:$0xff]  }
 0x20b   :  { %v607_v3 = vpop.f32.mrf.mxu1  ;;  %v930_v4 = vpop.f32.mrf.mxu0  ;;  %3239 = vmatpush3.bf16.msra.mxu0 %v3424_v42 }
 0x20c   :  { %3209 = vmatpush3.bf16.msra.mxu1 %v3411_v63  ;;  %3240 = vmatprep.subr.bf16.mxu0 %v3452_v34 }
 0x20d   :  { %v2945_v6 = vpop.f32.mrf.mxu1  ;;  %v3005_v7 = vpop.f32.mrf.mxu0  ;;  %3210 = vmatprep.subr.bf16.mxu1 %v3452_v34 }
 0x20f   :  { %3241 = vmatpush3.bf16.msra.mxu0 %v3425_v48 }
 0x210   :  { %3211 = vmatpush3.bf16.msra.mxu1 %v3412_v5 }
 0x211   :  { %3212 = vmatprep.subr.bf16.mxu1 %v3452_v34 }
 0x214   :  { %3213 = vmatpush3.bf16.msra.mxu1 %v3413_v49 }
 0x215   :  { %3214 = vmatprep.subr.bf16.mxu1 %v3452_v34 }
 0x218   :  { %3215 = vmatpush3.bf16.msra.mxu1 %v3414_v8 }
 0x219   :  { %3216 = vmatprep.subr.bf16.mxu1 %v3452_v34 }
 0x21c   :  { %3217 = vmatpush3.bf16.msra.mxu1 %v3415_v9 }
 0x21d   :  { %3218 = vmatprep.subr.bf16.mxu1 %v3452_v34 }
 0x220   :  { %3219 = vmatpush3.bf16.msra.mxu1 %v3416_v10 }
 0x221   :  { %3220 = vmatprep.subr.bf16.mxu1 %v3452_v34 }
 0x224   :  { %3221 = vmatpush3.bf16.msra.mxu1 %v3417_v11 }
 0x227   :  { %v819_v13 = vpop.f32.mrf.mxu1  ;;  %v1143_v14 = vpop.f32.mrf.mxu0  ;;  %3223 = vmatmul.mubr.bf16.vlgmr.msra.gmra.mxu1 %v2030_v12 }
 0x228   :  { %v825_v15 = vadd.f32 %v819_v13, %v717_v2 }
 0x229   :  { %v2984_v16 = vpop.f32.mrf.mxu1  ;;  %v3044_v17 = vpop.f32.mrf.mxu0 }
 0x22a   :  { %v933_v18 = vadd.f32 %v927_v60, %v825_v15 }
 0x22b   :  { %v822_v19 = vpop.f32.mrf.mxu1  ;;  %v1146_v20 = vpop.f32.mrf.mxu0 }
 0x22d   :  { %v2985_v21 = vpop.f32.mrf.mxu1  ;;  %v3045_v22 = vpop.f32.mrf.mxu0 }
 0x22e   :  { %v2680_v22 = vld [vmem:[%s4215_s6] ss:$0 sm:$0xff] }
 0x247   :  { %v1035_v23 = vpop.f32.mrf.mxu1  ;;  %v1357_v24 = vpop.f32.mrf.mxu0 }
 0x248   :  { %v1041_v25 = vadd.f32 %v1035_v23, %v933_v18 }
 0x249   :  { %v3024_v26 = vpop.f32.mrf.mxu1  ;;  %v3084_v27 = vpop.f32.mrf.mxu0 }
 0x24a   :  { %v1149_v28 = vadd.f32 %v1143_v14, %v1041_v25  ;;  %v2679_v14 = vld [vmem:[%s4213_s4] ss:$0 sm:$0xff]  ;;  %s3454_s4 = smov [#allocation2]  }
 0x24b   :  { %v1038_v29 = vpop.f32.mrf.mxu1  ;;  %v1360_v30 = vpop.f32.mrf.mxu0  ;;  %s2262_s6 = sshll.u32 %s3454_s4, 4  ;;  %s2263_s6 = int_to_ptr.vmem [resolvable:$true] %s2262_s6 }
 0x24c   :  { %s3430_s9 = scalar_lea.vmem %s2263_s6, 32  ;;  %p3435_p1 = scmp.lt.s32.totalorder %s2263_s6, %s2263_s6 }
 0x24d   :  { %v3025_v62 = vpop.f32.mrf.mxu1  ;;  %v3085_v31 = vpop.f32.mrf.mxu0  ;;  %p3431_p0 = scmp.ne.s32.totalorder %s2263_s6, %s3430_s9  ;;  %p3436_p2 = scmp.lt.s32.totalorder %s3430_s9, %s3430_s9 }
 0x24f   :  { %p3437_p3 = por %p3436_p2, %p3435_p1 }
 0x251   :  { %p3438_p4 = pnand %p3437_p3, %p3431_p0 }
 0x267   :  { %v1251_v39 = vpop.f32.mrf.mxu1  ;;  %v1574_v40 = vpop.f32.mrf.mxu0 }
 0x268   :  { %v1257_v41 = vadd.f32 %v1251_v39, %v1149_v28 }
 0x269   :  { %v3064_v43 = vpop.f32.mrf.mxu1  ;;  %v3124_v44 = vpop.f32.mrf.mxu0 }
 0x26a   :  { %v1363_v45 = vadd.f32 %v1357_v24, %v1257_v41 }
 0x26b   :  { %v1254_v46 = vpop.f32.mrf.mxu1  ;;  %v1577_v47 = vpop.f32.mrf.mxu0 }
 0x26d   :  { %v3065_v50 = vpop.f32.mrf.mxu1  ;;  %v3125_v51 = vpop.f32.mrf.mxu0 }
 0x287   :  { %v1466_v52 = vpop.f32.mrf.mxu1  ;;  %v1790_v53 = vpop.f32.mrf.mxu0 }
 0x288   :  { %v1472_v54 = vadd.f32 %v1466_v52, %v1363_v45 }
 0x289   :  { %v3104_v55 = vpop.f32.mrf.mxu1  ;;  %v3164_v56 = vpop.f32.mrf.mxu0 }
 0x28a   :  { %v1580_v57 = vadd.f32 %v1574_v40, %v1472_v54 }
 0x28b   :  { %v1469_v58 = vpop.f32.mrf.mxu1  ;;  %v1793_v59 = vpop.f32.mrf.mxu0 }
 0x28d   :  { %v3105_v60 = vpop.f32.mrf.mxu1  ;;  %v3165_v61 = vpop.f32.mrf.mxu0 }
 0x2a7   :  { %v1682_v63 = vpop.f32.mrf.mxu1  ;;  %v2006_v0 = vpop.f32.mrf.mxu0 }
 0x2a8   :  { %v1688_v34 = vadd.f32 %v1682_v63, %v1580_v57 }
 0x2a9   :  { %v3144_v1 = vpop.f32.mrf.mxu1  ;;  %v3204_v2 = vpop.f32.mrf.mxu0 }
 0x2aa   :  { %v1796_v3 = vadd.f32 %v1790_v53, %v1688_v34 }
 0x2ab   :  { %v1685_v4 = vpop.f32.mrf.mxu1  ;;  %v2009_v5 = vpop.f32.mrf.mxu0 }
 0x2ad   :  { %v3145_v6 = vpop.f32.mrf.mxu1  ;;  %v3205_v7 = vpop.f32.mrf.mxu0 }
 0x2c7   :  { %v1898_v49 = vpop.f32.mrf.mxu1 }
 0x2c8   :  { %v1904_v11 = vadd.f32 %v1898_v49, %v1796_v3 }
 0x2c9   :  { %v3184_v8 = vpop.f32.mrf.mxu1 }
 0x2ca   :  { %v2012_v12 = vadd.f32 %v2006_v0, %v1904_v11 }
 0x2cb   :  { %v1901_v9 = vpop.f32.mrf.mxu1 }
 0x2cd   :  { %v3185_v10 = vpop.f32.mrf.mxu1 }
 0x2e7   :  { %v2114_v13 = vpop.f32.mrf.mxu1 }
 0x2e8   :  { %v2120_v15 = vadd.f32 %v2114_v13, %v2012_v12 }
 0x2e9   :  { %v3224_v16 = vpop.f32.mrf.mxu1 }
 0x2ea   :  { %v2128_v17 = vadd.f32 %v2679_v14, %v2120_v15 }
 0x2eb   :  { %v2117_v18 = vpop.f32.mrf.mxu1 }
 0x2ec   :  { %v2129_v19 = vmax.f32 %v2128_v17, 0.0 }
 0x2ed   :  { %v3225_v20 = vpop.f32.mrf.mxu1 }
 0x2ee   :  { %v2130_v21 = vpack.c.bf16 %v2129_v19, %v2129_v19 }
 0x2f0   :  { %3243 = vmatmul.mubr.bf16.vlgmr.msra.gmra.mxu0 %v2130_v21 }
 0x3b0   :  { %v2236_v23 = vpop.f32.mrf.mxu0 }
 0x3b1   :  { %v2237_v24 = vadd.f32 %v2680_v22, %v2236_v23 }
 0x3b2   :  { %v3244_v25 = vpop.f32.mrf.mxu0 }
 0x3b3   :  { %v2243_v26 = vsel %vm2242_vm3, %v2237_v24, -inf }
 0x3b4   :  { %2244 = vmax.xlane.f32.xlu0 %v2243_v26  ;;  %v2239_v27 = vpop.f32.mrf.mxu0 }
 0x3b6   :  { %v3245_v28 = vpop.f32.mrf.mxu0 }
 0x43d   :  { %v2245_v29 = vpop.xlane.xlu0 %2244 }
 0x43e   :  { %v2246_v30 = vsub.f32 %v2237_v24, %v2245_v29 }
 0x440   :  { %v2247_v62 = vmul.f32 1.442695, %v2246_v30 }
 0x442   :  { %3426 = vpow2.f32 %v2247_v62 }
 0x44f   :  { %v3427_v31 = vpop.eup %3426 }
 0x450   :  { %v2249_v32 = vsel %vm2242_vm3, %v3427_v31, 0.0 }
 0x451   :  { %2250 = vadd.xlane.f32.xlu0 %v2249_v32 }
 0x4da   :  { %v2251_v33 = vpop.xlane.xlu0 %2250 }
 0x4db   :  { %3428 = vlog2.f32 %v2251_v33 }
 0x4e8   :  { %v3429_v35 = vpop.eup %3428 }
 0x4e9   :  { %v2253_v36 = vmul.f32 0.6931472, %v3429_v35 }
 0x4eb   :  { %v2254_v37 = vsub.f32 %v2246_v30, %v2253_v36 }
 0x4ed   :  { %2255 = vst [vmem:[#allocation2] sm:$0x3] %v2254_v37 }
 0x4ee   :  { %3441 = shalt.err (!%p3438_p4)
}
 0x4ef   :  { %2265 = dma.vmem_to_hbm [thread:$0]  %s2263_s6, 32, %s4216_s7, [#allocation3]  }
 0x4f0   :  { %3450 = dma.done.wait [#allocation3], 32  }
 0x4f1   :  { %3451 = vsyncadd [#allocation3], 4294967264 }
 0x4f2   :  { %2269 = vsyncpa [#allocation3], 1 }

</bundles_post_ra>
